<compile_context>
chip_gen: v7x
topology: tpu7x:2x2x1
jax: 0.10.0
libtpu: 0.0.40
codegen_flags: <defaults>
</compile_context>

<pallas_src>
import functools

import jax
import jax.numpy as jnp
from jax.experimental import pallas as pl
from jax.experimental.pallas import tpu as pltpu


def _layernorm(v, g, b, eps=1e-5):
    # f32 statistics (matches torch.nn.LayerNorm default eps).
    mu = jnp.mean(v, axis=-1, keepdims=True)
    var = jnp.mean((v - mu) ** 2, axis=-1, keepdims=True)
    return (v - mu) * jax.lax.rsqrt(var + eps) * g + b


def block_kernel(x_ref,
                 ln1g_ref, ln1b_ref, ln2g_ref, ln2b_ref,
                 wqkv_ref, wo_ref, bo_ref,
                 w1_ref, b1_ref, w2_ref, b2_ref,
                 bias_ref,
                 out_ref,
                 ctx_ref,
                 *, n_head, q_tile, kv_tile, ffn_chunk):
    # One batch element per grid step; squeezed batch dim -> (T, C) view.
    x = x_ref[...].astype(jnp.float32)                         # (T, C)
    T, C = x.shape
    hs = C // n_head

    # ---------------- self-attention branch: sa(ln1(x)) ----------------
    h = _layernorm(x, ln1g_ref[...], ln1b_ref[...])            # (T, C) f32

    # Fused QKV projection: one bf16 MXU pass, f32 accumulation.
    # The C**-0.5 attention scale is already folded into the Wq columns.
    qkv = jnp.dot(h.astype(jnp.bfloat16), wqkv_ref[...],
                  preferred_element_type=jnp.float32)          # (T, 3C) f32

    q3 = jnp.swapaxes(qkv[:, :C].reshape(T, n_head, hs), 0, 1).astype(jnp.bfloat16)
    k3 = jnp.swapaxes(qkv[:, C:2 * C].reshape(T, n_head, hs), 0, 1).astype(jnp.bfloat16)
    v3 = jnp.swapaxes(qkv[:, 2 * C:].reshape(T, n_head, hs), 0, 1).astype(jnp.bfloat16)

    tq = min(q_tile, T)
    tk = min(kv_tile, T)
    n_q = (T + tq - 1) // tq

    for qi in range(n_q):                                      # static unroll
        q_lo = qi * tq
        q_hi = min(q_lo + tq, T)
        rows = q_hi - q_lo
        qt = q3[:, q_lo:q_hi, :]                               # (H, rows, hs)

        m = jnp.full((n_head, rows, 1), -1e30, jnp.float32)
        l = jnp.zeros((n_head, rows, 1), jnp.float32)
        acc = jnp.zeros((n_head, rows, hs), jnp.float32)

        # Causal: kv tiles entirely above the diagonal are skipped statically.
        n_kv = (q_hi + tk - 1) // tk
        for kj in range(n_kv):                                 # static unroll
            k_lo = kj * tk
            k_hi = min(k_lo + tk, T)
            s = jnp.einsum('hqd,hkd->hqk', qt, k3[:, k_lo:k_hi, :],
                           preferred_element_type=jnp.float32)  # (H, rows, tk)
            s = s + bias_ref[q_lo:q_hi, k_lo:k_hi][None]        # additive mask
            m_new = jnp.maximum(m, s.max(axis=-1, keepdims=True))
            alpha = jnp.exp(m - m_new)
            p = jnp.exp(s - m_new)
            l = alpha * l + p.sum(axis=-1, keepdims=True)
            acc = alpha * acc + jnp.einsum(
                'hqk,hkd->hqd', p.astype(jnp.bfloat16), v3[:, k_lo:k_hi, :],
                preferred_element_type=jnp.float32)
            m = m_new

        # Normalize with an EUP reciprocal (VPU divide avoided).
        ctx = acc * pl.reciprocal(l, approx=True)               # (H, rows, hs)
        ctx_ref[q_lo:q_hi, :] = jnp.swapaxes(ctx, 0, 1).reshape(rows, C)

    sa = jnp.dot(ctx_ref[...].astype(jnp.bfloat16), wo_ref[...],
                 preferred_element_type=jnp.float32) + bo_ref[...]
    x = x + sa                                                  # residual 1 (f32)

    # ---------------- feed-forward branch: ffwd(ln2(x)) ----------------
    h2 = _layernorm(x, ln2g_ref[...], ln2b_ref[...]).astype(jnp.bfloat16)

    hidden = w1_ref.shape[1]
    chunk = min(ffn_chunk, hidden)
    n_chunks = (hidden + chunk - 1) // chunk

    acc = jnp.zeros((T, C), jnp.float32)
    for ci in range(n_chunks):                                  # static unroll
        lo = ci * chunk
        hi = min(lo + chunk, hidden)
        ff = jnp.dot(h2, w1_ref[:, lo:hi],
                     preferred_element_type=jnp.float32) + b1_ref[:, lo:hi]
        ff = jnp.maximum(ff, 0.0)                               # ReLU (f32)
        acc = acc + jnp.dot(ff.astype(jnp.bfloat16), w2_ref[lo:hi, :],
                            preferred_element_type=jnp.float32)

    x = x + acc + b2_ref[...]                                   # residual 2 (f32)
    out_ref[...] = x.astype(out_ref.dtype)                      # single dense store


def prepare_block_params(params, block_size):
    """One-time host-side weight prep (hoisted out of the per-layer call)."""
    C = params["wq"].shape[0]
    scale = jnp.float32(C) ** -0.5        # reference scales by n_embd**-0.5
    wqkv = jnp.concatenate(
        [params["wq"] * scale, params["wk"], params["wv"]], axis=1
    ).astype(jnp.bfloat16)
    tril = jnp.tril(jnp.ones((block_size, block_size), jnp.bool_))
    causal_bias = jnp.where(tril, 0.0, -1e30).astype(jnp.float32)
    return {
        "ln1_g": params["ln1_g"].astype(jnp.float32),
        "ln1_b": params["ln1_b"].astype(jnp.float32),
        "ln2_g": params["ln2_g"].astype(jnp.float32),
        "ln2_b": params["ln2_b"].astype(jnp.float32),
        "wqkv": wqkv,
        "wo": params["wo"].astype(jnp.bfloat16),
        "bo": params["bo"].astype(jnp.float32),
        "w1": params["w1"].astype(jnp.bfloat16),
        "b1": params["b1"].astype(jnp.float32),
        "w2": params["w2"].astype(jnp.bfloat16),
        "b2": params["b2"].astype(jnp.float32),
        "causal_bias": causal_bias,
    }


def _estimate_vmem_bytes(T, C, hidden, n_head, tq, tk, fc):
    hs = C // n_head
    bf, f4 = 2, 4
    weights = bf * (3 * C * C + C * C + 2 * C * hidden)      # bf16, single-buffered
    small = f4 * (6 * C + hidden + T * T)                    # ln/bias params + causal bias
    io = 2 * 2 * f4 * T * C                                  # x & out, double-buffered
    act = f4 * T * 3 * C + bf * 3 * T * C + f4 * T * C       # qkv, q3/k3/v3, ctx scratch
    attn = f4 * n_head * tq * (2 * tk + hs + 2)              # s/p block, acc, m/l
    ffn = f4 * T * (2 * fc + C) + bf * T * C                 # ff chunk, acc, h2
    return weights + small + io + act + attn + ffn


def _build_block_call(B, T, C, hidden, n_head, q_tile, kv_tile, ffn_chunk,
                      out_dtype, single_buffer_weights):
    tq, tk, fc = min(q_tile, T), min(kv_tile, T), min(ffn_chunk, hidden)

    def const_spec(shape):
        kw = {}
        if single_buffer_weights:
            # Grid-invariant inputs are never re-DMA'd; one buffer is enough.
            kw["pipeline_mode"] = pl.Buffered(1)
        return pl.BlockSpec(shape, lambda b: (0, 0), **kw)

    in_specs = [
        pl.BlockSpec((None, T, C), lambda b: (b, 0, 0)),          # x
        const_spec((1, C)), const_spec((1, C)),                   # ln1 gamma/beta
        const_spec((1, C)), const_spec((1, C)),                   # ln2 gamma/beta
        const_spec((C, 3 * C)),                                   # Wqkv (bf16)
        const_spec((C, C)), const_spec((1, C)),                   # Wproj (bf16), bproj
        const_spec((C, hidden)), const_spec((1, hidden)),         # W1 (bf16), b1
        const_spec((hidden, C)), const_spec((1, C)),              # W2 (bf16), b2
        const_spec((T, T)),                                       # causal additive bias
    ]

    est = _estimate_vmem_bytes(T, C, hidden, n_head, tq, tk, fc)
    vmem_limit = int(max(32 << 20, min(int(1.5 * est) + (2 << 20), 100 << 20)))

    return pl.pallas_call(
        functools.partial(block_kernel, n_head=n_head, q_tile=tq,
                          kv_tile=tk, ffn_chunk=fc),
        out_shape=jax.ShapeDtypeStruct((B, T, C), out_dtype),
        grid=(B,),
        in_specs=in_specs,
        out_specs=pl.BlockSpec((None, T, C), lambda b: (b, 0, 0)),
        scratch_shapes=[pltpu.VMEM((T, C), jnp.float32)],         # attention ctx
        compiler_params=pltpu.CompilerParams(
            dimension_semantics=("parallel",),
            vmem_limit_bytes=vmem_limit),
    )


def transformer_block(x, prepared, n_head, *,
                      q_tile=256, kv_tile=512, ffn_chunk=1024):
    # NOTE(perf): ffn_chunk=1024 suits v5e/v6e (128 MiB VMEM); use <=512 on
    # v7x (64 MiB VMEM).  All tiles clamp to the actual problem size.
    B, T, C = x.shape
    hidden = prepared["w1"].shape[1]
    bias = prepared["causal_bias"][:T, :T]
    args = (x,
            prepared["ln1_g"], prepared["ln1_b"],
            prepared["ln2_g"], prepared["ln2_b"],
            prepared["wqkv"], prepared["wo"], prepared["bo"],
            prepared["w1"], prepared["b1"], prepared["w2"], prepared["b2"],
            bias)
    try:
        call = _build_block_call(B, T, C, hidden, n_head, q_tile, kv_tile,
                                 ffn_chunk, x.dtype, single_buffer_weights=True)
        return jax.block_until_ready(call(*args))
    except Exception:
        # TODO(synk): pl.Buffered(1) single-buffering of grid-invariant weights
        # rejected by this jax version -> fall back to default double-buffering.
        call = _build_block_call(B, T, C, hidden, n_head, q_tile, kv_tile,
                                 ffn_chunk, x.dtype, single_buffer_weights=False)
        return jax.block_until_ready(call(*args))


def reference_block(x, p, n_head):
    """Pure-JAX f32 reference mirroring the PyTorch module (eval mode)."""
    B, T, C = x.shape
    hs = C // n_head

    def ln(v, g, b):
        mu = jnp.mean(v, -1, keepdims=True)
        var = jnp.mean((v - mu) ** 2, -1, keepdims=True)
        return (v - mu) / jnp.sqrt(var + 1e-5) * g[0] + b[0]

    h = ln(x, p["ln1_g"], p["ln1_b"])
    q = h @ p["wq"]; k = h @ p["wk"]; v = h @ p["wv"]
    q = q.reshape(B, T, n_head, hs).transpose(0, 2, 1, 3)
    k = k.reshape(B, T, n_head, hs).transpose(0, 2, 1, 3)
    v = v.reshape(B, T, n_head, hs).transpose(0, 2, 1, 3)
    wei = jnp.einsum("bhqd,bhkd->bhqk", q, k) * C ** (-0.5)
    mask = jnp.tril(jnp.ones((T, T), bool))
    wei = jnp.where(mask, wei, -jnp.inf)
    wei = jax.nn.softmax(wei, -1)
    sa = jnp.einsum("bhqk,bhkd->bhqd", wei, v).transpose(0, 2, 1, 3).reshape(B, T, C)
    sa = sa @ p["wo"] + p["bo"][0]
    x = x + sa
    h2 = ln(x, p["ln2_g"], p["ln2_b"])
    ff = jnp.maximum(h2 @ p["w1"] + p["b1"][0], 0.0) @ p["w2"] + p["b2"][0]
    return x + ff


if __name__ == "__main__":
    # Small shapes: batch=2, seq(block_size)=8, n_embd=32, n_head=4 (head_size=8).
    B, T, C, n_head = 2, 8, 32, 4

    key = jax.random.PRNGKey(0)
    ks = jax.random.split(key, 12)
    sc = 0.02
    params = {
        "ln1_g": jnp.ones((1, C), jnp.float32),
        "ln1_b": jnp.zeros((1, C), jnp.float32),
        "ln2_g": jnp.ones((1, C), jnp.float32),
        "ln2_b": jnp.zeros((1, C), jnp.float32),
        "wq": sc * jax.random.normal(ks[0], (C, C), jnp.float32),
        "wk": sc * jax.random.normal(ks[1], (C, C), jnp.float32),
        "wv": sc * jax.random.normal(ks[2], (C, C), jnp.float32),
        "wo": sc * jax.random.normal(ks[3], (C, C), jnp.float32),
        "bo": sc * jax.random.normal(ks[4], (1, C), jnp.float32),
        "w1": sc * jax.random.normal(ks[5], (C, 4 * C), jnp.float32),
        "b1": sc * jax.random.normal(ks[6], (1, 4 * C), jnp.float32),
        "w2": sc * jax.random.normal(ks[7], (4 * C, C), jnp.float32),
        "b2": sc * jax.random.normal(ks[8], (1, C), jnp.float32),
    }
    x = jax.random.normal(ks[9], (B, T, C), jnp.float32)

    prepared = prepare_block_params(params, block_size=T)   # one-time weight prep
    out = transformer_block(x, prepared, n_head)
    out = jax.block_until_ready(out)

    ref = reference_block(x, params, n_head)
    assert out.shape == (B, T, C)
    # Tolerance loosened vs. pure-f32 because MXU operands are bf16 (f32 acc);
    # observed error is ~1e-3, bound at 2e-2.
    err = float(jnp.max(jnp.abs(out - ref)))
    assert jnp.allclose(out, ref, atol=2e-2, rtol=2e-2), (
        f"mismatch vs pure-JAX reference (max abs err {err})")

    print("KERNEL_OK")
</pallas_src>

<mosaic_0001>
module attributes {stable_mosaic.version = 11 : i64} {
  func.func @block_kernel(%arg0: i32, %arg1: memref<1x8x32xf32, #tpu.memory_space<vmem>>, %arg2: memref<1x32xf32, #tpu.memory_space<vmem>>, %arg3: memref<1x32xf32, #tpu.memory_space<vmem>>, %arg4: memref<1x32xf32, #tpu.memory_space<vmem>>, %arg5: memref<1x32xf32, #tpu.memory_space<vmem>>, %arg6: memref<32x96xbf16, #tpu.memory_space<vmem>>, %arg7: memref<32x32xbf16, #tpu.memory_space<vmem>>, %arg8: memref<1x32xf32, #tpu.memory_space<vmem>>, %arg9: memref<32x128xbf16, #tpu.memory_space<vmem>>, %arg10: memref<1x128xf32, #tpu.memory_space<vmem>>, %arg11: memref<128x32xbf16, #tpu.memory_space<vmem>>, %arg12: memref<1x32xf32, #tpu.memory_space<vmem>>, %arg13: memref<8x8xf32, #tpu.memory_space<vmem>>, %arg14: memref<1x8x32xf32, #tpu.memory_space<vmem>>, %arg15: memref<8x32xf32, #tpu.memory_space<vmem>>) attributes {dimension_semantics = [#tpu.dimension_semantics<parallel>], iteration_bounds = array<i64: 2>, scalar_prefetch = 0 : i64, scratch_operands = 1 : i64, tpu.core_type = #tpu.core_type<tc>, window_params = [{transform_indices = @transform_0, window_bounds = array<i64: 1, 8, 32>}, {pipeline_mode = #tpu.pipeline_mode<synchronous>, transform_indices = @transform_1, window_bounds = array<i64: 1, 32>}, {pipeline_mode = #tpu.pipeline_mode<synchronous>, transform_indices = @transform_2, window_bounds = array<i64: 1, 32>}, {pipeline_mode = #tpu.pipeline_mode<synchronous>, transform_indices = @transform_3, window_bounds = array<i64: 1, 32>}, {pipeline_mode = #tpu.pipeline_mode<synchronous>, transform_indices = @transform_4, window_bounds = array<i64: 1, 32>}, {pipeline_mode = #tpu.pipeline_mode<synchronous>, transform_indices = @transform_5, window_bounds = array<i64: 32, 96>}, {pipeline_mode = #tpu.pipeline_mode<synchronous>, transform_indices = @transform_6, window_bounds = array<i64: 32, 32>}, {pipeline_mode = #tpu.pipeline_mode<synchronous>, transform_indices = @transform_7, window_bounds = array<i64: 1, 32>}, {pipeline_mode = #tpu.pipeline_mode<synchronous>, transform_indices = @transform_8, window_bounds = array<i64: 32, 128>}, {pipeline_mode = #tpu.pipeline_mode<synchronous>, transform_indices = @transform_9, window_bounds = array<i64: 1, 128>}, {pipeline_mode = #tpu.pipeline_mode<synchronous>, transform_indices = @transform_10, window_bounds = array<i64: 128, 32>}, {pipeline_mode = #tpu.pipeline_mode<synchronous>, transform_indices = @transform_11, window_bounds = array<i64: 1, 32>}, {pipeline_mode = #tpu.pipeline_mode<synchronous>, transform_indices = @transform_12, window_bounds = array<i64: 8, 8>}, {transform_indices = @transform_13, window_bounds = array<i64: 1, 8, 32>}]} {
    %c0 = arith.constant 0 : index
    %c0_0 = arith.constant 0 : index
    %c0_1 = arith.constant 0 : index
    %0 = vector.load %arg1[%c0, %c0_0, %c0_1] : memref<1x8x32xf32, #tpu.memory_space<vmem>>, vector<1x8x32xf32>
    %1 = vector.shape_cast %0 : vector<1x8x32xf32> to vector<8x32xf32>
    %c0_2 = arith.constant 0 : index
    %c0_3 = arith.constant 0 : index
    %2 = vector.load %arg2[%c0_2, %c0_3] : memref<1x32xf32, #tpu.memory_space<vmem>>, vector<1x32xf32>
    %c0_4 = arith.constant 0 : index
    %c0_5 = arith.constant 0 : index
    %3 = vector.load %arg3[%c0_4, %c0_5] : memref<1x32xf32, #tpu.memory_space<vmem>>, vector<1x32xf32>
    %cst = arith.constant dense<0.000000e+00> : vector<8xf32>
    %4 = vector.multi_reduction <add>, %1, %cst [1] : vector<8x32xf32> to vector<8xf32>
    %5 = vector.shape_cast %4 : vector<8xf32> to vector<8x1xf32>
    %cst_6 = arith.constant 3.200000e+01 : f32
    %6 = vector.broadcast %cst_6 : f32 to vector<8x1xf32>
    %7 = arith.divf %5, %6 : vector<8x1xf32>
    %8 = vector.broadcast %7 : vector<8x1xf32> to vector<8x32xf32>
    %9 = arith.subf %1, %8 : vector<8x32xf32>
    %10 = arith.mulf %9, %9 : vector<8x32xf32>
    %cst_7 = arith.constant dense<0.000000e+00> : vector<8xf32>
    %11 = vector.multi_reduction <add>, %10, %cst_7 [1] : vector<8x32xf32> to vector<8xf32>
    %12 = vector.shape_cast %11 : vector<8xf32> to vector<8x1xf32>
    %cst_8 = arith.constant 3.200000e+01 : f32
    %13 = vector.broadcast %cst_8 : f32 to vector<8x1xf32>
    %14 = arith.divf %12, %13 : vector<8x1xf32>
    %15 = vector.broadcast %7 : vector<8x1xf32> to vector<8x32xf32>
    %16 = arith.subf %1, %15 : vector<8x32xf32>
    %cst_9 = arith.constant 9.99999974E-6 : f32
    %17 = vector.broadcast %cst_9 : f32 to vector<8x1xf32>
    %18 = arith.addf %14, %17 : vector<8x1xf32>
    %19 = math.rsqrt %18 : vector<8x1xf32>
    %20 = vector.broadcast %19 : vector<8x1xf32> to vector<8x32xf32>
    %21 = arith.mulf %16, %20 : vector<8x32xf32>
    %22 = vector.broadcast %2 : vector<1x32xf32> to vector<8x32xf32>
    %23 = arith.mulf %21, %22 : vector<8x32xf32>
    %24 = vector.broadcast %3 : vector<1x32xf32> to vector<8x32xf32>
    %25 = arith.addf %23, %24 : vector<8x32xf32>
    %26 = arith.truncf %25 : vector<8x32xf32> to vector<8x32xbf16>
    %c0_10 = arith.constant 0 : index
    %c0_11 = arith.constant 0 : index
    %27 = vector.load %arg6[%c0_10, %c0_11] : memref<32x96xbf16, #tpu.memory_space<vmem>>, vector<32x96xbf16>
    %cst_12 = arith.constant dense<0.000000e+00> : vector<8x96xf32>
    %28 = tpu.matmul %26, %27, %cst_12 {dimension_numbers = #tpu.dot_dimension_numbers<[1], [0], [0], [1], [0, 0, 1, 1], [], []>} : vector<8x32xbf16>, vector<32x96xbf16>, vector<8x96xf32> -> vector<8x96xf32>
    %29 = vector.extract_strided_slice %28 {offsets = [0, 0], sizes = [8, 32], strides = [1, 1]} : vector<8x96xf32> to vector<8x32xf32>
    %30 = vector.shape_cast %29 : vector<8x32xf32> to vector<8x4x8xf32>
    %31 = tpu.transpose %30, [1, 0, 2] : vector<8x4x8xf32> -> vector<4x8x8xf32>
    %32 = arith.truncf %31 : vector<4x8x8xf32> to vector<4x8x8xbf16>
    %33 = vector.extract_strided_slice %28 {offsets = [0, 32], sizes = [8, 32], strides = [1, 1]} : vector<8x96xf32> to vector<8x32xf32>
    %34 = vector.shape_cast %33 : vector<8x32xf32> to vector<8x4x8xf32>
    %35 = tpu.transpose %34, [1, 0, 2] : vector<8x4x8xf32> -> vector<4x8x8xf32>
    %36 = arith.truncf %35 : vector<4x8x8xf32> to vector<4x8x8xbf16>
    %37 = vector.extract_strided_slice %28 {offsets = [0, 64], sizes = [8, 32], strides = [1, 1]} : vector<8x96xf32> to vector<8x32xf32>
    %38 = vector.shape_cast %37 : vector<8x32xf32> to vector<8x4x8xf32>
    %39 = tpu.transpose %38, [1, 0, 2] : vector<8x4x8xf32> -> vector<4x8x8xf32>
    %40 = arith.truncf %39 : vector<4x8x8xf32> to vector<4x8x8xbf16>
    %cst_13 = arith.constant -1.000000e+30 : f32
    %41 = vector.broadcast %cst_13 : f32 to vector<4x8x1xf32>
    %cst_14 = arith.constant 0.000000e+00 : f32
    %42 = vector.broadcast %cst_14 : f32 to vector<4x8x1xf32>
    %cst_15 = arith.constant 0.000000e+00 : f32
    %43 = vector.broadcast %cst_15 : f32 to vector<4x8x8xf32>
    "tpu.trace_start"() <{level = 10 : i32, message = "hqd,hkd->hqk"}> : () -> ()
    %cst_16 = arith.constant dense<0.000000e+00> : vector<4x8x8xf32>
    %44 = tpu.matmul %32, %36, %cst_16 {dimension_numbers = #tpu.dot_dimension_numbers<[2], [2], [1], [1], [0, 0, 0, 1, 1, 1], [0], [0]>} : vector<4x8x8xbf16>, vector<4x8x8xbf16>, vector<4x8x8xf32> -> vector<4x8x8xf32>
    "tpu.trace_stop"() : () -> ()
    %c0_17 = arith.constant 0 : index
    %c0_18 = arith.constant 0 : index
    %45 = vector.load %arg13[%c0_17, %c0_18] : memref<8x8xf32, #tpu.memory_space<vmem>>, vector<8x8xf32>
    %46 = vector.shape_cast %45 : vector<8x8xf32> to vector<1x8x8xf32>
    %47 = vector.broadcast %46 : vector<1x8x8xf32> to vector<4x8x8xf32>
    %48 = arith.addf %44, %47 : vector<4x8x8xf32>
    %cst_19 = arith.constant dense<0xFF800000> : vector<4x8xf32>
    %49 = vector.multi_reduction <maximumf>, %48, %cst_19 [2] : vector<4x8x8xf32> to vector<4x8xf32>
    %50 = vector.shape_cast %49 : vector<4x8xf32> to vector<4x8x1xf32>
    %51 = arith.maximumf %41, %50 : vector<4x8x1xf32>
    %52 = arith.subf %41, %51 : vector<4x8x1xf32>
    %53 = math.exp %52 : vector<4x8x1xf32>
    %54 = vector.broadcast %51 : vector<4x8x1xf32> to vector<4x8x8xf32>
    %55 = arith.subf %48, %54 : vector<4x8x8xf32>
    %56 = math.exp %55 : vector<4x8x8xf32>
    %57 = arith.mulf %53, %42 : vector<4x8x1xf32>
    %cst_20 = arith.constant dense<0.000000e+00> : vector<4x8xf32>
    %58 = vector.multi_reduction <add>, %56, %cst_20 [2] : vector<4x8x8xf32> to vector<4x8xf32>
    %59 = vector.shape_cast %58 : vector<4x8xf32> to vector<4x8x1xf32>
    %60 = arith.addf %57, %59 : vector<4x8x1xf32>
    %61 = vector.broadcast %53 : vector<4x8x1xf32> to vector<4x8x8xf32>
    %62 = arith.mulf %61, %43 : vector<4x8x8xf32>
    %63 = arith.truncf %56 : vector<4x8x8xf32> to vector<4x8x8xbf16>
    "tpu.trace_start"() <{level = 10 : i32, message = "hqk,hkd->hqd"}> : () -> ()
    %cst_21 = arith.constant dense<0.000000e+00> : vector<4x8x8xf32>
    %64 = tpu.matmul %63, %40, %cst_21 {dimension_numbers = #tpu.dot_dimension_numbers<[2], [1], [1], [2], [0, 0, 0, 1, 1, 2], [0], [0]>} : vector<4x8x8xbf16>, vector<4x8x8xbf16>, vector<4x8x8xf32> -> vector<4x8x8xf32>
    "tpu.trace_stop"() : () -> ()
    %65 = arith.addf %62, %64 : vector<4x8x8xf32>
    %66 = tpu.reciprocal %60 {approx = true} : vector<4x8x1xf32> -> vector<4x8x1xf32>
    %67 = vector.broadcast %66 : vector<4x8x1xf32> to vector<4x8x8xf32>
    %68 = arith.mulf %65, %67 : vector<4x8x8xf32>
    %69 = tpu.transpose %68, [1, 0, 2] : vector<4x8x8xf32> -> vector<8x4x8xf32>
    %70 = vector.shape_cast %69 : vector<8x4x8xf32> to vector<8x32xf32>
    %c0_22 = arith.constant 0 : index
    %c0_23 = arith.constant 0 : index
    %71 = vector.load %arg15[%c0_22, %c0_23] : memref<8x32xf32, #tpu.memory_space<vmem>>, vector<8x32xf32>
    tpu.vector_store %arg15[%c0_22, %c0_23], %70 {strides = array<i32>} : memref<8x32xf32, #tpu.memory_space<vmem>>, vector<8x32xf32>,
    %c0_24 = arith.constant 0 : index
    %c0_25 = arith.constant 0 : index
    %72 = vector.load %arg15[%c0_24, %c0_25] : memref<8x32xf32, #tpu.memory_space<vmem>>, vector<8x32xf32>
    %73 = arith.truncf %72 : vector<8x32xf32> to vector<8x32xbf16>
    %c0_26 = arith.constant 0 : index
    %c0_27 = arith.constant 0 : index
    %74 = vector.load %arg7[%c0_26, %c0_27] : memref<32x32xbf16, #tpu.memory_space<vmem>>, vector<32x32xbf16>
    %cst_28 = arith.constant dense<0.000000e+00> : vector<8x32xf32>
    %75 = tpu.matmul %73, %74, %cst_28 {dimension_numbers = #tpu.dot_dimension_numbers<[1], [0], [0], [1], [0, 0, 1, 1], [], []>} : vector<8x32xbf16>, vector<32x32xbf16>, vector<8x32xf32> -> vector<8x32xf32>
    %c0_29 = arith.constant 0 : index
    %c0_30 = arith.constant 0 : index
    %76 = vector.load %arg8[%c0_29, %c0_30] : memref<1x32xf32, #tpu.memory_space<vmem>>, vector<1x32xf32>
    %77 = vector.broadcast %76 : vector<1x32xf32> to vector<8x32xf32>
    %78 = arith.addf %75, %77 : vector<8x32xf32>
    %79 = arith.addf %1, %78 : vector<8x32xf32>
    %c0_31 = arith.constant 0 : index
    %c0_32 = arith.constant 0 : index
    %80 = vector.load %arg4[%c0_31, %c0_32] : memref<1x32xf32, #tpu.memory_space<vmem>>, vector<1x32xf32>
    %c0_33 = arith.constant 0 : index
    %c0_34 = arith.constant 0 : index
    %81 = vector.load %arg5[%c0_33, %c0_34] : memref<1x32xf32, #tpu.memory_space<vmem>>, vector<1x32xf32>
    %cst_35 = arith.constant dense<0.000000e+00> : vector<8xf32>
    %82 = vector.multi_reduction <add>, %79, %cst_35 [1] : vector<8x32xf32> to vector<8xf32>
    %83 = vector.shape_cast %82 : vector<8xf32> to vector<8x1xf32>
    %cst_36 = arith.constant 3.200000e+01 : f32
    %84 = vector.broadcast %cst_36 : f32 to vector<8x1xf32>
    %85 = arith.divf %83, %84 : vector<8x1xf32>
    %86 = vector.broadcast %85 : vector<8x1xf32> to vector<8x32xf32>
    %87 = arith.subf %79, %86 : vector<8x32xf32>
    %88 = arith.mulf %87, %87 : vector<8x32xf32>
    %cst_37 = arith.constant dense<0.000000e+00> : vector<8xf32>
    %89 = vector.multi_reduction <add>, %88, %cst_37 [1] : vector<8x32xf32> to vector<8xf32>
    %90 = vector.shape_cast %89 : vector<8xf32> to vector<8x1xf32>
    %cst_38 = arith.constant 3.200000e+01 : f32
    %91 = vector.broadcast %cst_38 : f32 to vector<8x1xf32>
    %92 = arith.divf %90, %91 : vector<8x1xf32>
    %93 = vector.broadcast %85 : vector<8x1xf32> to vector<8x32xf32>
    %94 = arith.subf %79, %93 : vector<8x32xf32>
    %cst_39 = arith.constant 9.99999974E-6 : f32
    %95 = vector.broadcast %cst_39 : f32 to vector<8x1xf32>
    %96 = arith.addf %92, %95 : vector<8x1xf32>
    %97 = math.rsqrt %96 : vector<8x1xf32>
    %98 = vector.broadcast %97 : vector<8x1xf32> to vector<8x32xf32>
    %99 = arith.mulf %94, %98 : vector<8x32xf32>
    %100 = vector.broadcast %80 : vector<1x32xf32> to vector<8x32xf32>
    %101 = arith.mulf %99, %100 : vector<8x32xf32>
    %102 = vector.broadcast %81 : vector<1x32xf32> to vector<8x32xf32>
    %103 = arith.addf %101, %102 : vector<8x32xf32>
    %104 = arith.truncf %103 : vector<8x32xf32> to vector<8x32xbf16>
    %cst_40 = arith.constant 0.000000e+00 : f32
    %105 = vector.broadcast %cst_40 : f32 to vector<8x32xf32>
    %c0_41 = arith.constant 0 : index
    %c0_42 = arith.constant 0 : index
    %106 = vector.load %arg9[%c0_41, %c0_42] : memref<32x128xbf16, #tpu.memory_space<vmem>>, vector<32x128xbf16>
    %cst_43 = arith.constant dense<0.000000e+00> : vector<8x128xf32>
    %107 = tpu.matmul %104, %106, %cst_43 {dimension_numbers = #tpu.dot_dimension_numbers<[1], [0], [0], [1], [0, 0, 1, 1], [], []>} : vector<8x32xbf16>, vector<32x128xbf16>, vector<8x128xf32> -> vector<8x128xf32>
    %c0_44 = arith.constant 0 : index
    %c0_45 = arith.constant 0 : index
    %108 = vector.load %arg10[%c0_44, %c0_45] : memref<1x128xf32, #tpu.memory_space<vmem>>, vector<1x128xf32>
    %109 = vector.broadcast %108 : vector<1x128xf32> to vector<8x128xf32>
    %110 = arith.addf %107, %109 : vector<8x128xf32>
    %cst_46 = arith.constant 0.000000e+00 : f32
    %111 = vector.broadcast %cst_46 : f32 to vector<8x128xf32>
    %112 = arith.maximumf %110, %111 : vector<8x128xf32>
    %113 = arith.truncf %112 : vector<8x128xf32> to vector<8x128xbf16>
    %c0_47 = arith.constant 0 : index
    %c0_48 = arith.constant 0 : index
    %114 = vector.load %arg11[%c0_47, %c0_48] : memref<128x32xbf16, #tpu.memory_space<vmem>>, vector<128x32xbf16>
    %cst_49 = arith.constant dense<0.000000e+00> : vector<8x32xf32>
    %115 = tpu.matmul %113, %114, %cst_49 {dimension_numbers = #tpu.dot_dimension_numbers<[1], [0], [0], [1], [0, 0, 1, 1], [], []>} : vector<8x128xbf16>, vector<128x32xbf16>, vector<8x32xf32> -> vector<8x32xf32>
    %116 = arith.addf %105, %115 : vector<8x32xf32>
    %117 = arith.addf %79, %116 : vector<8x32xf32>
    %c0_50 = arith.constant 0 : index
    %c0_51 = arith.constant 0 : index
    %118 = vector.load %arg12[%c0_50, %c0_51] : memref<1x32xf32, #tpu.memory_space<vmem>>, vector<1x32xf32>
    %119 = vector.broadcast %118 : vector<1x32xf32> to vector<8x32xf32>
    %120 = arith.addf %117, %119 : vector<8x32xf32>
    %c0_52 = arith.constant 0 : index
    %c0_53 = arith.constant 0 : index
    %c0_54 = arith.constant 0 : index
    %121 = vector.load %arg14[%c0_52, %c0_53, %c0_54] : memref<1x8x32xf32, #tpu.memory_space<vmem>>, vector<1x8x32xf32>
    %122 = vector.shape_cast %121 : vector<1x8x32xf32> to vector<8x32xf32>
    %123 = vector.shape_cast %120 : vector<8x32xf32> to vector<1x8x32xf32>
    tpu.vector_store %arg14[%c0_52, %c0_53, %c0_54], %123 {strides = array<i32>} : memref<1x8x32xf32, #tpu.memory_space<vmem>>, vector<1x8x32xf32>,
    return
  }
  func.func @transform_0(%arg0: i32) -> (i32, i32, i32) {
    %c0_i32 = arith.constant 0 : i32
    %c0_i32_0 = arith.constant 0 : i32
    %c0_i32_1 = arith.constant 0 : i32
    return %arg0, %c0_i32, %c0_i32_0 : i32, i32, i32
  }
  func.func @transform_1(%arg0: i32) -> (i32, i32) {
    %c0_i32 = arith.constant 0 : i32
    %c0_i32_0 = arith.constant 0 : i32
    %c0_i32_1 = arith.constant 0 : i32
    return %c0_i32, %c0_i32_0 : i32, i32
  }
  func.func @transform_2(%arg0: i32) -> (i32, i32) {
    %c0_i32 = arith.constant 0 : i32
    %c0_i32_0 = arith.constant 0 : i32
    %c0_i32_1 = arith.constant 0 : i32
    return %c0_i32, %c0_i32_0 : i32, i32
  }
  func.func @transform_3(%arg0: i32) -> (i32, i32) {
    %c0_i32 = arith.constant 0 : i32
    %c0_i32_0 = arith.constant 0 : i32
    %c0_i32_1 = arith.constant 0 : i32
    return %c0_i32, %c0_i32_0 : i32, i32
  }
  func.func @transform_4(%arg0: i32) -> (i32, i32) {
    %c0_i32 = arith.constant 0 : i32
    %c0_i32_0 = arith.constant 0 : i32
    %c0_i32_1 = arith.constant 0 : i32
    return %c0_i32, %c0_i32_0 : i32, i32
  }
  func.func @transform_5(%arg0: i32) -> (i32, i32) {
    %c0_i32 = arith.constant 0 : i32
    %c0_i32_0 = arith.constant 0 : i32
    %c0_i32_1 = arith.constant 0 : i32
    return %c0_i32, %c0_i32_0 : i32, i32
  }
  func.func @transform_6(%arg0: i32) -> (i32, i32) {
    %c0_i32 = arith.constant 0 : i32
    %c0_i32_0 = arith.constant 0 : i32
    %c0_i32_1 = arith.constant 0 : i32
    return %c0_i32, %c0_i32_0 : i32, i32
  }
  func.func @transform_7(%arg0: i32) -> (i32, i32) {
    %c0_i32 = arith.constant 0 : i32
    %c0_i32_0 = arith.constant 0 : i32
    %c0_i32_1 = arith.constant 0 : i32
    return %c0_i32, %c0_i32_0 : i32, i32
  }
  func.func @transform_8(%arg0: i32) -> (i32, i32) {
    %c0_i32 = arith.constant 0 : i32
    %c0_i32_0 = arith.constant 0 : i32
    %c0_i32_1 = arith.constant 0 : i32
    return %c0_i32, %c0_i32_0 : i32, i32
  }
  func.func @transform_9(%arg0: i32) -> (i32, i32) {
    %c0_i32 = arith.constant 0 : i32
    %c0_i32_0 = arith.constant 0 : i32
    %c0_i32_1 = arith.constant 0 : i32
    return %c0_i32, %c0_i32_0 : i32, i32
  }
  func.func @transform_10(%arg0: i32) -> (i32, i32) {
    %c0_i32 = arith.constant 0 : i32
    %c0_i32_0 = arith.constant 0 : i32
    %c0_i32_1 = arith.constant 0 : i32
    return %c0_i32, %c0_i32_0 : i32, i32
  }
  func.func @transform_11(%arg0: i32) -> (i32, i32) {
    %c0_i32 = arith.constant 0 : i32
    %c0_i32_0 = arith.constant 0 : i32
    %c0_i32_1 = arith.constant 0 : i32
    return %c0_i32, %c0_i32_0 : i32, i32
  }
  func.func @transform_12(%arg0: i32) -> (i32, i32) {
    %c0_i32 = arith.constant 0 : i32
    %c0_i32_0 = arith.constant 0 : i32
    %c0_i32_1 = arith.constant 0 : i32
    return %c0_i32, %c0_i32_0 : i32, i32
  }
  func.func @transform_13(%arg0: i32) -> (i32, i32, i32) {
    %c0_i32 = arith.constant 0 : i32
    %c0_i32_0 = arith.constant 0 : i32
    %c0_i32_1 = arith.constant 0 : i32
    return %arg0, %c0_i32, %c0_i32_0 : i32, i32, i32
  }
}

module attributes {stable_mosaic.version = 11 : i64} {
  func.func @block_kernel(%arg0: i32, %arg1: memref<1x8x32xf32, #tpu.memory_space<vmem>>, %arg2: memref<1x32xf32, #tpu.memory_space<vmem>>, %arg3: memref<1x32xf32, #tpu.memory_space<vmem>>, %arg4: memref<1x32xf32, #tpu.memory_space<vmem>>, %arg5: memref<1x32xf32, #tpu.memory_space<vmem>>, %arg6: memref<32x96xbf16, #tpu.memory_space<vmem>>, %arg7: memref<32x32xbf16, #tpu.memory_space<vmem>>, %arg8: memref<1x32xf32, #tpu.memory_space<vmem>>, %arg9: memref<32x128xbf16, #tpu.memory_space<vmem>>, %arg10: memref<1x128xf32, #tpu.memory_space<vmem>>, %arg11: memref<128x32xbf16, #tpu.memory_space<vmem>>, %arg12: memref<1x32xf32, #tpu.memory_space<vmem>>, %arg13: memref<8x8xf32, #tpu.memory_space<vmem>>, %arg14: memref<1x8x32xf32, #tpu.memory_space<vmem>>, %arg15: memref<8x32xf32, #tpu.memory_space<vmem>>) attributes {dimension_semantics = [#tpu.dimension_semantics<parallel>], iteration_bounds = array<i64: 2>, scalar_prefetch = 0 : i64, scratch_operands = 1 : i64, tpu.core_type = #tpu.core_type<tc>, window_params = [{transform_indices = @transform_0, window_bounds = array<i64: 1, 8, 32>}, {pipeline_mode = #tpu.pipeline_mode<synchronous>, transform_indices = @transform_1, window_bounds = array<i64: 1, 32>}, {pipeline_mode = #tpu.pipeline_mode<synchronous>, transform_indices = @transform_2, window_bounds = array<i64: 1, 32>}, {pipeline_mode = #tpu.pipeline_mode<synchronous>, transform_indices = @transform_3, window_bounds = array<i64: 1, 32>}, {pipeline_mode = #tpu.pipeline_mode<synchronous>, transform_indices = @transform_4, window_bounds = array<i64: 1, 32>}, {pipeline_mode = #tpu.pipeline_mode<synchronous>, transform_indices = @transform_5, window_bounds = array<i64: 32, 96>}, {pipeline_mode = #tpu.pipeline_mode<synchronous>, transform_indices = @transform_6, window_bounds = array<i64: 32, 32>}, {pipeline_mode = #tpu.pipeline_mode<synchronous>, transform_indices = @transform_7, window_bounds = array<i64: 1, 32>}, {pipeline_mode = #tpu.pipeline_mode<synchronous>, transform_indices = @transform_8, window_bounds = array<i64: 32, 128>}, {pipeline_mode = #tpu.pipeline_mode<synchronous>, transform_indices = @transform_9, window_bounds = array<i64: 1, 128>}, {pipeline_mode = #tpu.pipeline_mode<synchronous>, transform_indices = @transform_10, window_bounds = array<i64: 128, 32>}, {pipeline_mode = #tpu.pipeline_mode<synchronous>, transform_indices = @transform_11, window_bounds = array<i64: 1, 32>}, {pipeline_mode = #tpu.pipeline_mode<synchronous>, transform_indices = @transform_12, window_bounds = array<i64: 8, 8>}, {transform_indices = @transform_13, window_bounds = array<i64: 1, 8, 32>}]} {
    %c0 = arith.constant 0 : index
    %c0_0 = arith.constant 0 : index
    %c0_1 = arith.constant 0 : index
    %0 = vector.load %arg1[%c0, %c0_0, %c0_1] : memref<1x8x32xf32, #tpu.memory_space<vmem>>, vector<1x8x32xf32>
    %1 = vector.shape_cast %0 : vector<1x8x32xf32> to vector<8x32xf32>
    %c0_2 = arith.constant 0 : index
    %c0_3 = arith.constant 0 : index
    %2 = vector.load %arg2[%c0_2, %c0_3] : memref<1x32xf32, #tpu.memory_space<vmem>>, vector<1x32xf32>
    %c0_4 = arith.constant 0 : index
    %c0_5 = arith.constant 0 : index
    %3 = vector.load %arg3[%c0_4, %c0_5] : memref<1x32xf32, #tpu.memory_space<vmem>>, vector<1x32xf32>
    %cst = arith.constant dense<0.000000e+00> : vector<8xf32>
    %4 = vector.multi_reduction <add>, %1, %cst [1] : vector<8x32xf32> to vector<8xf32>
    %5 = vector.shape_cast %4 : vector<8xf32> to vector<8x1xf32>
    %cst_6 = arith.constant 3.200000e+01 : f32
    %6 = vector.broadcast %cst_6 : f32 to vector<8x1xf32>
    %7 = arith.divf %5, %6 : vector<8x1xf32>
    %8 = vector.broadcast %7 : vector<8x1xf32> to vector<8x32xf32>
    %9 = arith.subf %1, %8 : vector<8x32xf32>
    %10 = arith.mulf %9, %9 : vector<8x32xf32>
    %cst_7 = arith.constant dense<0.000000e+00> : vector<8xf32>
    %11 = vector.multi_reduction <add>, %10, %cst_7 [1] : vector<8x32xf32> to vector<8xf32>
    %12 = vector.shape_cast %11 : vector<8xf32> to vector<8x1xf32>
    %cst_8 = arith.constant 3.200000e+01 : f32
    %13 = vector.broadcast %cst_8 : f32 to vector<8x1xf32>
    %14 = arith.divf %12, %13 : vector<8x1xf32>
    %15 = vector.broadcast %7 : vector<8x1xf32> to vector<8x32xf32>
    %16 = arith.subf %1, %15 : vector<8x32xf32>
    %cst_9 = arith.constant 9.99999974E-6 : f32
    %17 = vector.broadcast %cst_9 : f32 to vector<8x1xf32>
    %18 = arith.addf %14, %17 : vector<8x1xf32>
    %19 = math.rsqrt %18 : vector<8x1xf32>
    %20 = vector.broadcast %19 : vector<8x1xf32> to vector<8x32xf32>
    %21 = arith.mulf %16, %20 : vector<8x32xf32>
    %22 = vector.broadcast %2 : vector<1x32xf32> to vector<8x32xf32>
    %23 = arith.mulf %21, %22 : vector<8x32xf32>
    %24 = vector.broadcast %3 : vector<1x32xf32> to vector<8x32xf32>
    %25 = arith.addf %23, %24 : vector<8x32xf32>
    %26 = arith.truncf %25 : vector<8x32xf32> to vector<8x32xbf16>
    %c0_10 = arith.constant 0 : index
    %c0_11 = arith.constant 0 : index
    %27 = vector.load %arg6[%c0_10, %c0_11] : memref<32x96xbf16, #tpu.memory_space<vmem>>, vector<32x96xbf16>
    %cst_12 = arith.constant dense<0.000000e+00> : vector<8x96xf32>
    %28 = tpu.matmul %26, %27, %cst_12 {dimension_numbers = #tpu.dot_dimension_numbers<[1], [0], [0], [1], [0, 0, 1, 1], [], []>} : vector<8x32xbf16>, vector<32x96xbf16>, vector<8x96xf32> -> vector<8x96xf32>
    %29 = vector.extract_strided_slice %28 {offsets = [0, 0], sizes = [8, 32], strides = [1, 1]} : vector<8x96xf32> to vector<8x32xf32>
    %30 = vector.shape_cast %29 : vector<8x32xf32> to vector<8x4x8xf32>
    %31 = tpu.transpose %30, [1, 0, 2] : vector<8x4x8xf32> -> vector<4x8x8xf32>
    %32 = arith.truncf %31 : vector<4x8x8xf32> to vector<4x8x8xbf16>
    %33 = vector.extract_strided_slice %28 {offsets = [0, 32], sizes = [8, 32], strides = [1, 1]} : vector<8x96xf32> to vector<8x32xf32>
    %34 = vector.shape_cast %33 : vector<8x32xf32> to vector<8x4x8xf32>
    %35 = tpu.transpose %34, [1, 0, 2] : vector<8x4x8xf32> -> vector<4x8x8xf32>
    %36 = arith.truncf %35 : vector<4x8x8xf32> to vector<4x8x8xbf16>
    %37 = vector.extract_strided_slice %28 {offsets = [0, 64], sizes = [8, 32], strides = [1, 1]} : vector<8x96xf32> to vector<8x32xf32>
    %38 = vector.shape_cast %37 : vector<8x32xf32> to vector<8x4x8xf32>
    %39 = tpu.transpose %38, [1, 0, 2] : vector<8x4x8xf32> -> vector<4x8x8xf32>
    %40 = arith.truncf %39 : vector<4x8x8xf32> to vector<4x8x8xbf16>
    %cst_13 = arith.constant -1.000000e+30 : f32
    %41 = vector.broadcast %cst_13 : f32 to vector<4x8x1xf32>
    %cst_14 = arith.constant 0.000000e+00 : f32
    %42 = vector.broadcast %cst_14 : f32 to vector<4x8x1xf32>
    %cst_15 = arith.constant 0.000000e+00 : f32
    %43 = vector.broadcast %cst_15 : f32 to vector<4x8x8xf32>
    "tpu.trace_start"() <{level = 10 : i32, message = "hqd,hkd->hqk"}> : () -> ()
    %cst_16 = arith.constant dense<0.000000e+00> : vector<4x8x8xf32>
    %44 = tpu.matmul %32, %36, %cst_16 {dimension_numbers = #tpu.dot_dimension_numbers<[2], [2], [1], [1], [0, 0, 0, 1, 1, 1], [0], [0]>} : vector<4x8x8xbf16>, vector<4x8x8xbf16>, vector<4x8x8xf32> -> vector<4x8x8xf32>
    "tpu.trace_stop"() : () -> ()
    %c0_17 = arith.constant 0 : index
    %c0_18 = arith.constant 0 : index
    %45 = vector.load %arg13[%c0_17, %c0_18] : memref<8x8xf32, #tpu.memory_space<vmem>>, vector<8x8xf32>
    %46 = vector.shape_cast %45 : vector<8x8xf32> to vector<1x8x8xf32>
    %47 = vector.broadcast %46 : vector<1x8x8xf32> to vector<4x8x8xf32>
    %48 = arith.addf %44, %47 : vector<4x8x8xf32>
    %cst_19 = arith.constant dense<0xFF800000> : vector<4x8xf32>
    %49 = vector.multi_reduction <maximumf>, %48, %cst_19 [2] : vector<4x8x8xf32> to vector<4x8xf32>
    %50 = vector.shape_cast %49 : vector<4x8xf32> to vector<4x8x1xf32>
    %51 = arith.maximumf %41, %50 : vector<4x8x1xf32>
    %52 = arith.subf %41, %51 : vector<4x8x1xf32>
    %53 = math.exp %52 : vector<4x8x1xf32>
    %54 = vector.broadcast %51 : vector<4x8x1xf32> to vector<4x8x8xf32>
    %55 = arith.subf %48, %54 : vector<4x8x8xf32>
    %56 = math.exp %55 : vector<4x8x8xf32>
    %57 = arith.mulf %53, %42 : vector<4x8x1xf32>
    %cst_20 = arith.constant dense<0.000000e+00> : vector<4x8xf32>
    %58 = vector.multi_reduction <add>, %56, %cst_20 [2] : vector<4x8x8xf32> to vector<4x8xf32>
    %59 = vector.shape_cast %58 : vector<4x8xf32> to vector<4x8x1xf32>
    %60 = arith.addf %57, %59 : vector<4x8x1xf32>
    %61 = vector.broadcast %53 : vector<4x8x1xf32> to vector<4x8x8xf32>
    %62 = arith.mulf %61, %43 : vector<4x8x8xf32>
    %63 = arith.truncf %56 : vector<4x8x8xf32> to vector<4x8x8xbf16>
    "tpu.trace_start"() <{level = 10 : i32, message = "hqk,hkd->hqd"}> : () -> ()
    %cst_21 = arith.constant dense<0.000000e+00> : vector<4x8x8xf32>
    %64 = tpu.matmul %63, %40, %cst_21 {dimension_numbers = #tpu.dot_dimension_numbers<[2], [1], [1], [2], [0, 0, 0, 1, 1, 2], [0], [0]>} : vector<4x8x8xbf16>, vector<4x8x8xbf16>, vector<4x8x8xf32> -> vector<4x8x8xf32>
    "tpu.trace_stop"() : () -> ()
    %65 = arith.addf %62, %64 : vector<4x8x8xf32>
    %66 = tpu.reciprocal %60 {approx = true} : vector<4x8x1xf32> -> vector<4x8x1xf32>
    %67 = vector.broadcast %66 : vector<4x8x1xf32> to vector<4x8x8xf32>
    %68 = arith.mulf %65, %67 : vector<4x8x8xf32>
    %69 = tpu.transpose %68, [1, 0, 2] : vector<4x8x8xf32> -> vector<8x4x8xf32>
    %70 = vector.shape_cast %69 : vector<8x4x8xf32> to vector<8x32xf32>
    %c0_22 = arith.constant 0 : index
    %c0_23 = arith.constant 0 : index
    %71 = vector.load %arg15[%c0_22, %c0_23] : memref<8x32xf32, #tpu.memory_space<vmem>>, vector<8x32xf32>
    tpu.vector_store %arg15[%c0_22, %c0_23], %70 {strides = array<i32>} : memref<8x32xf32, #tpu.memory_space<vmem>>, vector<8x32xf32>,
    %c0_24 = arith.constant 0 : index
    %c0_25 = arith.constant 0 : index
    %72 = vector.load %arg15[%c0_24, %c0_25] : memref<8x32xf32, #tpu.memory_space<vmem>>, vector<8x32xf32>
    %73 = arith.truncf %72 : vector<8x32xf32> to vector<8x32xbf16>
    %c0_26 = arith.constant 0 : index
    %c0_27 = arith.constant 0 : index
    %74 = vector.load %arg7[%c0_26, %c0_27] : memref<32x32xbf16, #tpu.memory_space<vmem>>, vector<32x32xbf16>
    %cst_28 = arith.constant dense<0.000000e+00> : vector<8x32xf32>
    %75 = tpu.matmul %73, %74, %cst_28 {dimension_numbers = #tpu.dot_dimension_numbers<[1], [0], [0], [1], [0, 0, 1, 1], [], []>} : vector<8x32xbf16>, vector<32x32xbf16>, vector<8x32xf32> -> vector<8x32xf32>
    %c0_29 = arith.constant 0 : index
    %c0_30 = arith.constant 0 : index
    %76 = vector.load %arg8[%c0_29, %c0_30] : memref<1x32xf32, #tpu.memory_space<vmem>>, vector<1x32xf32>
    %77 = vector.broadcast %76 : vector<1x32xf32> to vector<8x32xf32>
    %78 = arith.addf %75, %77 : vector<8x32xf32>
    %79 = arith.addf %1, %78 : vector<8x32xf32>
    %c0_31 = arith.constant 0 : index
    %c0_32 = arith.constant 0 : index
    %80 = vector.load %arg4[%c0_31, %c0_32] : memref<1x32xf32, #tpu.memory_space<vmem>>, vector<1x32xf32>
    %c0_33 = arith.constant 0 : index
    %c0_34 = arith.constant 0 : index
    %81 = vector.load %arg5[%c0_33, %c0_34] : memref<1x32xf32, #tpu.memory_space<vmem>>, vector<1x32xf32>
    %cst_35 = arith.constant dense<0.000000e+00> : vector<8xf32>
    %82 = vector.multi_reduction <add>, %79, %cst_35 [1] : vector<8x32xf32> to vector<8xf32>
    %83 = vector.shape_cast %82 : vector<8xf32> to vector<8x1xf32>
    %cst_36 = arith.constant 3.200000e+01 : f32
    %84 = vector.broadcast %cst_36 : f32 to vector<8x1xf32>
    %85 = arith.divf %83, %84 : vector<8x1xf32>
    %86 = vector.broadcast %85 : vector<8x1xf32> to vector<8x32xf32>
    %87 = arith.subf %79, %86 : vector<8x32xf32>
    %88 = arith.mulf %87, %87 : vector<8x32xf32>
    %cst_37 = arith.constant dense<0.000000e+00> : vector<8xf32>
    %89 = vector.multi_reduction <add>, %88, %cst_37 [1] : vector<8x32xf32> to vector<8xf32>
    %90 = vector.shape_cast %89 : vector<8xf32> to vector<8x1xf32>
    %cst_38 = arith.constant 3.200000e+01 : f32
    %91 = vector.broadcast %cst_38 : f32 to vector<8x1xf32>
    %92 = arith.divf %90, %91 : vector<8x1xf32>
    %93 = vector.broadcast %85 : vector<8x1xf32> to vector<8x32xf32>
    %94 = arith.subf %79, %93 : vector<8x32xf32>
    %cst_39 = arith.constant 9.99999974E-6 : f32
    %95 = vector.broadcast %cst_39 : f32 to vector<8x1xf32>
    %96 = arith.addf %92, %95 : vector<8x1xf32>
    %97 = math.rsqrt %96 : vector<8x1xf32>
    %98 = vector.broadcast %97 : vector<8x1xf32> to vector<8x32xf32>
    %99 = arith.mulf %94, %98 : vector<8x32xf32>
    %100 = vector.broadcast %80 : vector<1x32xf32> to vector<8x32xf32>
    %101 = arith.mulf %99, %100 : vector<8x32xf32>
    %102 = vector.broadcast %81 : vector<1x32xf32> to vector<8x32xf32>
    %103 = arith.addf %101, %102 : vector<8x32xf32>
    %104 = arith.truncf %103 : vector<8x32xf32> to vector<8x32xbf16>
    %cst_40 = arith.constant 0.000000e+00 : f32
    %105 = vector.broadcast %cst_40 : f32 to vector<8x32xf32>
    %c0_41 = arith.constant 0 : index
    %c0_42 = arith.constant 0 : index
    %106 = vector.load %arg9[%c0_41, %c0_42] : memref<32x128xbf16, #tpu.memory_space<vmem>>, vector<32x128xbf16>
    %cst_43 = arith.constant dense<0.000000e+00> : vector<8x128xf32>
    %107 = tpu.matmul %104, %106, %cst_43 {dimension_numbers = #tpu.dot_dimension_numbers<[1], [0], [0], [1], [0, 0, 1, 1], [], []>} : vector<8x32xbf16>, vector<32x128xbf16>, vector<8x128xf32> -> vector<8x128xf32>
    %c0_44 = arith.constant 0 : index
    %c0_45 = arith.constant 0 : index
    %108 = vector.load %arg10[%c0_44, %c0_45] : memref<1x128xf32, #tpu.memory_space<vmem>>, vector<1x128xf32>
    %109 = vector.broadcast %108 : vector<1x128xf32> to vector<8x128xf32>
    %110 = arith.addf %107, %109 : vector<8x128xf32>
    %cst_46 = arith.constant 0.000000e+00 : f32
    %111 = vector.broadcast %cst_46 : f32 to vector<8x128xf32>
    %112 = arith.maximumf %110, %111 : vector<8x128xf32>
    %113 = arith.truncf %112 : vector<8x128xf32> to vector<8x128xbf16>
    %c0_47 = arith.constant 0 : index
    %c0_48 = arith.constant 0 : index
    %114 = vector.load %arg11[%c0_47, %c0_48] : memref<128x32xbf16, #tpu.memory_space<vmem>>, vector<128x32xbf16>
    %cst_49 = arith.constant dense<0.000000e+00> : vector<8x32xf32>
    %115 = tpu.matmul %113, %114, %cst_49 {dimension_numbers = #tpu.dot_dimension_numbers<[1], [0], [0], [1], [0, 0, 1, 1], [], []>} : vector<8x128xbf16>, vector<128x32xbf16>, vector<8x32xf32> -> vector<8x32xf32>
    %116 = arith.addf %105, %115 : vector<8x32xf32>
    %117 = arith.addf %79, %116 : vector<8x32xf32>
    %c0_50 = arith.constant 0 : index
    %c0_51 = arith.constant 0 : index
    %118 = vector.load %arg12[%c0_50, %c0_51] : memref<1x32xf32, #tpu.memory_space<vmem>>, vector<1x32xf32>
    %119 = vector.broadcast %118 : vector<1x32xf32> to vector<8x32xf32>
    %120 = arith.addf %117, %119 : vector<8x32xf32>
    %c0_52 = arith.constant 0 : index
    %c0_53 = arith.constant 0 : index
    %c0_54 = arith.constant 0 : index
    %121 = vector.load %arg14[%c0_52, %c0_53, %c0_54] : memref<1x8x32xf32, #tpu.memory_space<vmem>>, vector<1x8x32xf32>
    %122 = vector.shape_cast %121 : vector<1x8x32xf32> to vector<8x32xf32>
    %123 = vector.shape_cast %120 : vector<8x32xf32> to vector<1x8x32xf32>
    tpu.vector_store %arg14[%c0_52, %c0_53, %c0_54], %123 {strides = array<i32>} : memref<1x8x32xf32, #tpu.memory_space<vmem>>, vector<1x8x32xf32>,
    return
  }
  func.func @transform_0(%arg0: i32) -> (i32, i32, i32) {
    %c0_i32 = arith.constant 0 : i32
    %c0_i32_0 = arith.constant 0 : i32
    %c0_i32_1 = arith.constant 0 : i32
    return %arg0, %c0_i32, %c0_i32_0 : i32, i32, i32
  }
  func.func @transform_1(%arg0: i32) -> (i32, i32) {
    %c0_i32 = arith.constant 0 : i32
    %c0_i32_0 = arith.constant 0 : i32
    %c0_i32_1 = arith.constant 0 : i32
    return %c0_i32, %c0_i32_0 : i32, i32
  }
  func.func @transform_2(%arg0: i32) -> (i32, i32) {
    %c0_i32 = arith.constant 0 : i32
    %c0_i32_0 = arith.constant 0 : i32
    %c0_i32_1 = arith.constant 0 : i32
    return %c0_i32, %c0_i32_0 : i32, i32
  }
  func.func @transform_3(%arg0: i32) -> (i32, i32) {
    %c0_i32 = arith.constant 0 : i32
    %c0_i32_0 = arith.constant 0 : i32
    %c0_i32_1 = arith.constant 0 : i32
    return %c0_i32, %c0_i32_0 : i32, i32
  }
  func.func @transform_4(%arg0: i32) -> (i32, i32) {
    %c0_i32 = arith.constant 0 : i32
    %c0_i32_0 = arith.constant 0 : i32
    %c0_i32_1 = arith.constant 0 : i32
    return %c0_i32, %c0_i32_0 : i32, i32
  }
  func.func @transform_5(%arg0: i32) -> (i32, i32) {
    %c0_i32 = arith.constant 0 : i32
    %c0_i32_0 = arith.constant 0 : i32
    %c0_i32_1 = arith.constant 0 : i32
    return %c0_i32, %c0_i32_0 : i32, i32
  }
  func.func @transform_6(%arg0: i32) -> (i32, i32) {
    %c0_i32 = arith.constant 0 : i32
    %c0_i32_0 = arith.constant 0 : i32
    %c0_i32_1 = arith.constant 0 : i32
    return %c0_i32, %c0_i32_0 : i32, i32
  }
  func.func @transform_7(%arg0: i32) -> (i32, i32) {
    %c0_i32 = arith.constant 0 : i32
    %c0_i32_0 = arith.constant 0 : i32
    %c0_i32_1 = arith.constant 0 : i32
    return %c0_i32, %c0_i32_0 : i32, i32
  }
  func.func @transform_8(%arg0: i32) -> (i32, i32) {
    %c0_i32 = arith.constant 0 : i32
    %c0_i32_0 = arith.constant 0 : i32
    %c0_i32_1 = arith.constant 0 : i32
    return %c0_i32, %c0_i32_0 : i32, i32
  }
  func.func @transform_9(%arg0: i32) -> (i32, i32) {
    %c0_i32 = arith.constant 0 : i32
    %c0_i32_0 = arith.constant 0 : i32
    %c0_i32_1 = arith.constant 0 : i32
    return %c0_i32, %c0_i32_0 : i32, i32
  }
  func.func @transform_10(%arg0: i32) -> (i32, i32) {
    %c0_i32 = arith.constant 0 : i32
    %c0_i32_0 = arith.constant 0 : i32
    %c0_i32_1 = arith.constant 0 : i32
    return %c0_i32, %c0_i32_0 : i32, i32
  }
  func.func @transform_11(%arg0: i32) -> (i32, i32) {
    %c0_i32 = arith.constant 0 : i32
    %c0_i32_0 = arith.constant 0 : i32
    %c0_i32_1 = arith.constant 0 : i32
    return %c0_i32, %c0_i32_0 : i32, i32
  }
  func.func @transform_12(%arg0: i32) -> (i32, i32) {
    %c0_i32 = arith.constant 0 : i32
    %c0_i32_0 = arith.constant 0 : i32
    %c0_i32_1 = arith.constant 0 : i32
    return %c0_i32, %c0_i32_0 : i32, i32
  }
  func.func @transform_13(%arg0: i32) -> (i32, i32, i32) {
    %c0_i32 = arith.constant 0 : i32
    %c0_i32_0 = arith.constant 0 : i32
    %c0_i32_1 = arith.constant 0 : i32
    return %arg0, %c0_i32, %c0_i32_0 : i32, i32, i32
  }
}

</mosaic_0001>

<bundles_post_ra>
// kernel: tpu_custom_call.1
= control target key start
LH: loop header
LB: loop body
LE: loop exit
PB: predicated region body
PF: predicated region fallthrough
CT: control target
= control target key end

     0   :  { %s2738_s0 = inlined_call_operand.vmem [shape: f32[2,8,32], index: 0, kind: input, shape index: {}]   ;;  %s2739_s1 = inlined_call_operand.vmem [shape: f32[1,32], index: 1, kind: input, shape index: {}]   ;;  %s2740_s2 = inlined_call_operand.vmem [shape: f32[1,32], index: 2, kind: input, shape index: {}]   ;;  %s2741_s3 = inlined_call_operand.vmem [shape: f32[1,32], index: 3, kind: input, shape index: {}]   ;;  %s2742_s4 = inlined_call_operand.vmem [shape: f32[1,32], index: 4, kind: input, shape index: {}]   ;;  %s2743_s5 = inlined_call_operand.vmem [shape: bf16[32,96], index: 5, kind: input, shape index: {}]   ;;  %s2744_s6 = inlined_call_operand.vmem [shape: bf16[32,32], index: 6, kind: input, shape index: {}]   ;;  %s2745_s7 = inlined_call_operand.vmem [shape: f32[1,32], index: 7, kind: input, shape index: {}]   ;;  %s2746_s8 = inlined_call_operand.vmem [shape: bf16[32,128], index: 8, kind: input, shape index: {}]   ;;  %s2747_s9 = inlined_call_operand.vmem [shape: f32[1,128], index: 9, kind: input, shape index: {}]   ;;  %s2748_s10 = inlined_call_operand.vmem [shape: bf16[128,32], index: 10, kind: input, shape index: {}]   ;;  %s2749_s11 = inlined_call_operand.vmem [shape: f32[1,32], index: 11, kind: input, shape index: {}]   ;;  %s2750_s12 = inlined_call_operand.vmem [shape: f32[8,8], index: 12, kind: input, shape index: {}]   ;;  %s2751_s13 = inlined_call_operand.hbm [shape: f32[2,8,32], index: 13, kind: output, shape index: {}]  }
   0x1   :  { %2752 = sst [smem:[#allocation6_spill]] %s2738_s0 }
   0x2   :  { %2753 = sst [smem:[#allocation7_spill]] %s2739_s1 }
   0x3   :  { %2754 = sst [smem:[#allocation8_spill]] %s2740_s2 }
   0x4   :  { %18 = vsyncpa [#allocation4], 0 }
   0x5   :  { %20 = vsyncpa [#allocation4 + $0x1], 0  ;;  %s2354_s25 = smov 0   ;;  %s2356_s26 = smov 0  }
   0x6   :  { %s2358_s27 = smov 0   ;;  %s2360_s28 = smov 0  }
   0x7 LB: > { %s2375_s29 = sadd.s32 4294967295, %s2269_s28   ;;  %s1938_s30 = sadd.s32 4294967294, %s2269_s28   ;;  %s2269_s28 = sphi %s2360_s28, %s2763_s28   ;;  %s2265_s27 = sphi %s2358_s27, %s2762_s27   ;;  %s2261_s26 = sphi %s2356_s26, %s2761_s26   ;;  %s2257_s25 = sphi %s2354_s25, %s2760_s25  }
   0x8   : > { %s2379_s14 = sadd.s32 1, %s2269_s28   ;;  %s311_s15 = sadd.s32 1, %s2265_s27 }
   0x9   : > { %s308_s16 = ssub.s32 %s2269_s28, %s2379_s14  ;;  %p321_p0 = scmp.ne.s32.totalorder %s2265_s27, %s2261_s26 }
   0xa   : > { %p309_p1 = scmp.eq.s32.totalorder %s308_s16, 0  ;;  %p322_p2 = scmp.eq.s32.totalorder %s2375_s29, 1 }
   0xb   : > { %p327_p3 = scmp.ne.s32.totalorder %s2261_s26, %s2257_s25  ;;  %p328_p4 = scmp.eq.s32.totalorder %s1938_s30, 1 }
   0xc   : > { %s2390_s17 = scalar_select %p309_p1, %s2265_s27, %s311_s15  }
   0xd   : > { %p2392_p5 = por %p322_p2, %p321_p0  ;;  %p2396_p6 = por %p328_p4, %p327_p3 }
   0xe   : > { %p1941_p7 = scmp.ge.s32.totalorder %s2269_s28, 1  ;;  %p389_p8 = scmp.lt.s32.totalorder %s2269_s28, 3 }
  0x10   : > { %p390_p9 = pnand %p1941_p7, %p389_p8 }
  0x11   : > { %p432_p10 = scmp.lt.s32.totalorder (!%p390_p9), %s2375_s29, 1  ;;  %vm440_vm0 = vcmask (!%p390_p9), 261120   ;;  %s2757_s0 = sld [smem:[#allocation6_spill]] (!%p390_p9)  ;;  %v2165_v7 = vld [vmem:[%s2743_s5] sm:$0xff] (!%p390_p9)   ;;  %v2271_v8 = vmov (!%p390_p9), 0.0   ;;  %vm2272_vm1 = vmmov (!%p390_p9), 0   ;;  %v544_v29 = vlaneseq (!%p390_p9) }
  0x12   : > { %393 = sbr.rel (%p390_p9) target bundleno = 2575 (0xa0f), region = 72  ;;  %2022 = vmatprep.subr.bf16.mxu0 (!%p390_p9), %v2271_v8  ;;  %2026 = vmatprep.mubr.msk.bf16.mxu0 (!%p390_p9), %vm2272_vm1, %v2271_v8  ;;  %v2166_v9 = vld [vmem:[%s2743_s5 + $0x8] sm:$0xff] (!%p390_p9)   ;;  %s2758_s1 = sld [smem:[#allocation7_spill]] (!%p390_p9)  ;;  %v2278_v27 = vmov (!%p390_p9), 1983009808   ;;  %vm984_vm2 = vcmask (!%p390_p9), 64512  }
  0x13   : > { %2023 = vmatpush3.bf16.msra.mxu0 (!%p390_p9), %v2165_v7  ;;  %2042 = vmatprep.subr.bf16.mxu1 (!%p390_p9), %v2271_v8  ;;  %s2759_s2 = sld [smem:[#allocation8_spill]] (!%p390_p9)  ;;  %s2273_s30 = smov (!%p390_p9), 104   ;;  %v542_v28 = vunpack.c.l.s4 (!%p390_p9), %v2278_v27  ;;  %v545_v31 = vshrl.u32 (!%p390_p9), %v544_v29, 7  ;;  %v2279_v33 = vmov (!%p390_p9), 1934713408   ;;  %vm1236_vm3 = vcmask (!%p390_p9), 1043456  }
  0x14   : > { %2024 = vmatprep.subr.bf16.mxu0 (!%p390_p9), %v2271_v8  ;;  %2044 = vmatprep.mubr.msk.bf16.mxu1 (!%p390_p9), %vm2272_vm1, %v2271_v8  ;;  %s2274_s15 = smov (!%p390_p9), 120   ;;  %s2275_s16 = smov (!%p390_p9), 112   ;;  %v574_v34 = vunpack.c.l.s4 (!%p390_p9), %v2279_v33  ;;  %vm1579_vm4 = vcmask (!%p390_p9), 130048   ;;  %vm1581_vm5 = vcmask (!%p390_p9), 195584  }
  0x15   : > { %v543_v30 = vunpack.c.0.s8 (!%p390_p9), %v542_v28  ;;  %s2282_s22 = smov (!%p390_p9), 24   ;;  %s1985_s23 = sshll.u32 (!%p390_p9), %s2375_s29, 7 }
  0x16   : > { %v575_v41 = vunpack.c.0.s8 (!%p390_p9), %v574_v34 }
  0x17   : > { %2025 = vmatpush3.bf16.msra.mxu0 (!%p390_p9), %v2166_v9  ;;  %v2448_v37 = vsub.s32 (!%p390_p9), %v543_v30, %v545_v31 }
  0x18   : > { %2030 = vmatprep.subr.bf16.mxu0 (!%p390_p9), %v2271_v8  ;;  %v1944_v14 = vld [vmem:[%s2758_s1] ss:$0 sm:$0xff] (!%p390_p9)  ;;  %v2458_v47 = vsub.s32 (!%p390_p9), %v575_v41, %v545_v31  ;;  %s2695_s1 = scalar_lea.hbm (!%p390_p9), %s2751_s13, %s1985_s23 }
  0x19   : > { %s433_s20 = scalar_select %p432_p10, %s2375_s29, 1  ;;  %v1945_v16 = vld [vmem:[%s2759_s2] ss:$0 sm:$0xff] }
  0x1b   : > { %s1943_s21 = sshll.u32 %s433_s20, 3  ;;  %s2276_s20 = smov 96  }
  0x1c   : > { %s435_s24 = scalar_lea.vmem %s2757_s0, %s1943_s21  ;;  %s2277_s21 = smov 64  }
  0x1d   : > { %v2407_v0 = vld [vmem:[%s435_s24] sm:$0xff] }
  0x1e   : > { %v441_v1 = vsel %vm440_vm0, %v2407_v0, 0.0 }
  0x1f   : > { %442 = vadd.xlane.f32.xlu0 %v441_v1 }
  0xac   : > { %v443_v2 = vpop.xlane.xlu0 %442 }
  0xad   : > { %v445_v3 = vmul.f32 0.03125, %v443_v2 }
  0xaf   : > { %v446_v4 = vsub.f32 %v2407_v0, %v445_v3 }
  0xb1   : > { %v447_v5 = vmul.f32 %v446_v4, %v446_v4 }
  0xb3   : > { %v448_v6 = vsel %vm440_vm0, %v447_v5, 0.0 }
  0xb4   : > { %449 = vadd.xlane.f32.xlu0 %v448_v6 }
 0x141   : > { %v450_v10 = vpop.xlane.xlu0 %449 }
 0x142   : > { %v451_v11 = vmul.f32 0.03125, %v450_v10 }
 0x144   : > { %v452_v12 = vadd.f32 1e-05, %v451_v11 }
 0x146   : > { %2179 = vrsqrt.f32 %v452_v12 }
 0x150   : > { %v2180_v13 = vpop.eup %2179 }
 0x151   : > { %v454_v15 = vmul.f32 %v2180_v13, %v446_v4 }
 0x153   : > { %v461_v17 = vmul.f32 %v1944_v14, %v454_v15 }
 0x155   : > { %v468_v18 = vadd.f32 %v1945_v16, %v461_v17 }
 0x157   : > { %v469_v19 = vpack.c.bf16 %v468_v18, %v468_v18 }
 0x159   : > { %2027 = vmatmul.mubr.msk.bf16.vlgmr.msra.gmra.mrb[0].mxu0 %vm440_vm0, %v469_v19 }
 0x15a   : > { %2032 = vmatprep.mubr.msk.bf16.mxu0 %vm2272_vm1, %v2271_v8 }
 0x22c   : > { %v523_v20 = vpop.f32.mrb[0].mxu0 }
 0x22d   : > { %536 = vrot.lane.b32.xlu0 %v523_v20, %s2273_s30  ;;  %530 = vrot.lane.b32.xlu1 %v523_v20, %s2274_s15  ;;  %v2028_v21 = vpop.f32.mrb[1].mxu0 }
 0x22e   : > { %v526_v22 = vpop.f32.mrb[2].mxu0 }
 0x22f   : > { %v2029_v23 = vpop.f32.mrb[3].mxu0 }
 0x231   : > { %533 = vrot.lane.b32.xlu1 %v523_v20, %s2275_s16  ;;  %s429_s16 = sand.u32 1, %s2261_s26  }
 0x232   : > { %s1866_s29 = scalar_lea.sflag [#allocation4], %s429_s16 }
 0x235   : > { %679 = vrot.lane.b32.xlu1 %v523_v20, %s2276_s20 }
 0x29f   : > { %v2436_v24 = vpop.permute.xlu1 %530  ;;  %v2442_v26 = vpop.permute.xlu0 %536 }
 0x2a0   : > { %681 = vrot.lane.b32.xlu1 %v2436_v24, %s2276_s20  ;;  %v555_v38 = vcombine.low %v2436_v24, %v2442_v26  ;;  %v556_v39 = vcombine.high %v2436_v24, %v2442_v26 }
 0x2a2   : > { %v563_v44 = vrot.slane %v555_v38, %v2448_v37  ;;  %v570_v45 = vrot.slane %v556_v39, %v2448_v37 }
 0x2a3   : > { %v2439_v25 = vpop.permute.xlu1 %533 }
 0x2a4   : > { %683 = vrot.lane.b32.xlu1 %v2439_v25, %s2276_s20  ;;  %v539_v35 = vcombine.low %v523_v20, %v2439_v25  ;;  %v540_v36 = vcombine.high %v523_v20, %v2439_v25 }
 0x2a6   : > { %v547_v42 = vrot.slane %v539_v35, %v2448_v37  ;;  %v554_v43 = vrot.slane %v540_v36, %v2448_v37 }
 0x2a7   : > { %v680_v32 = vpop.permute.xlu1 %679 }
 0x2a8   : > { %685 = vrot.lane.b32.xlu1 %v2442_v26, %s2276_s20  ;;  %v571_v48 = vcombine.low %v547_v42, %v563_v44  ;;  %v572_v49 = vcombine.high %v547_v42, %v563_v44  ;;  %v587_v50 = vcombine.low %v554_v43, %v570_v45  ;;  %v588_v51 = vcombine.high %v554_v43, %v570_v45  ;;  %s2280_s20 = smov 16  }
 0x2aa   : > { %v579_v57 = vrot.slane %v571_v48, %v2458_v47  ;;  %v586_v58 = vrot.slane %v572_v49, %v2458_v47  ;;  %v595_v59 = vrot.slane %v587_v50, %v2458_v47  ;;  %v602_v60 = vrot.slane %v588_v51, %v2458_v47 }
 0x2ac   : > { %831 = vrot.lane.b32.xlu1 %v523_v20, %s2277_s21  ;;  %v607_v6 = vcombine.low %v579_v57, %v586_v58  ;;  %v1949_v7 = vcombine.high %v579_v57, %v586_v58  ;;  %v623_v9 = vcombine.low %v595_v59, %v602_v60  ;;  %v1950_v10 = vcombine.high %v595_v59, %v602_v60 }
 0x2ae   : > { %v614_v19 = vrot.slane %v607_v6, %v2448_v37  ;;  %v622_v20 = vrot.slane %v1949_v7, %v2448_v37  ;;  %v630_v21 = vrot.slane %v623_v9, %v2448_v37  ;;  %v638_v22 = vrot.slane %v1950_v10, %v2448_v37 }
 0x2b0   : > { %v639_v34 = vcombine.low %v614_v19, %v622_v20  ;;  %v655_v35 = vcombine.low %v630_v21, %v638_v22  ;;  %v640_v36 = vcombine.high %v614_v19, %v622_v20  ;;  %v656_v38 = vcombine.high %v630_v21, %v638_v22 }
 0x2b2   : > { %v647_v45 = vrot.slane %v639_v34, %v2458_v47  ;;  %v654_v50 = vrot.slane %v640_v36, %v2458_v47  ;;  %v670_v51 = vrot.slane %v656_v38, %v2458_v47 }
 0x312   : > { %v682_v40 = vpop.permute.xlu1 %681 }
 0x316   : > { %v684_v46 = vpop.permute.xlu1 %683 }
 0x317   : > { %v691_v52 = vcombine.low %v680_v32, %v684_v46  ;;  %v692_v53 = vcombine.high %v680_v32, %v684_v46  ;;  %v663_v46 = vrot.slane %v655_v35, %v2458_v47 }
 0x319   : > { %v699_v61 = vrot.slane %v691_v52, %v2448_v37  ;;  %v706_v62 = vrot.slane %v692_v53, %v2448_v37 }
 0x31a   : > { %v686_v54 = vpop.permute.xlu1 %685 }
 0x31b   : > { %v707_v55 = vcombine.low %v682_v40, %v686_v54  ;;  %v708_v56 = vcombine.high %v682_v40, %v686_v54 }
 0x31d   : > { %v715_v63 = vrot.slane %v707_v55, %v2448_v37  ;;  %v722_v1 = vrot.slane %v708_v56, %v2448_v37  ;;  %v671_v55 = vcombine.low %v647_v45, %v663_v46  ;;  %v673_v56 = vcombine.low %v654_v50, %v670_v51 }
 0x31e   : > { %v832_v34 = vpop.permute.xlu1 %831 }
 0x31f   : > { %v723_v2 = vcombine.low %v699_v61, %v715_v63  ;;  %v724_v3 = vcombine.high %v699_v61, %v715_v63  ;;  %v739_v4 = vcombine.low %v706_v62, %v722_v1  ;;  %v740_v5 = vcombine.high %v706_v62, %v722_v1 }
 0x320   : > { %v675_v58 = vpack.c.bf16 %v671_v55, %v671_v55  ;;  %v677_v59 = vpack.c.bf16 %v673_v56, %v673_v56  ;;  %v672_v62 = vcombine.high %v647_v45, %v663_v46 }
 0x321   : > { %v731_v11 = vrot.slane %v723_v2, %v2458_v47  ;;  %v738_v12 = vrot.slane %v724_v3, %v2458_v47  ;;  %v747_v13 = vrot.slane %v739_v4, %v2458_v47  ;;  %v754_v14 = vrot.slane %v740_v5, %v2458_v47  ;;  %v983_v5 = vld [vmem:[%s2750_s12] sm:$0xff] }
 0x322   : > { %v676_v1 = vpack.c.bf16 %v672_v62, %v672_v62  ;;  %v674_v3 = vcombine.high %v654_v50, %v670_v51 }
 0x323   : > { %v759_v15 = vcombine.low %v731_v11, %v738_v12  ;;  %v1951_v16 = vcombine.high %v731_v11, %v738_v12  ;;  %v775_v17 = vcombine.low %v747_v13, %v754_v14  ;;  %v1952_v18 = vcombine.high %v747_v13, %v754_v14 }
 0x324   : > { %v678_v4 = vpack.c.bf16 %v674_v3, %v674_v3 }
 0x325   : > { %v766_v23 = vrot.slane %v759_v15, %v2448_v37  ;;  %v774_v27 = vrot.slane %v1951_v16, %v2448_v37  ;;  %v782_v28 = vrot.slane %v775_v17, %v2448_v37  ;;  %v790_v29 = vrot.slane %v1952_v18, %v2448_v37 }
 0x327   : > { %v791_v30 = vcombine.low %v766_v23, %v774_v27  ;;  %v807_v31 = vcombine.low %v782_v28, %v790_v29  ;;  %v792_v32 = vcombine.high %v766_v23, %v774_v27  ;;  %v808_v33 = vcombine.high %v782_v28, %v790_v29 }
 0x329   : > { %v799_v39 = vrot.slane %v791_v30, %v2458_v47  ;;  %v815_v40 = vrot.slane %v807_v31, %v2458_v47  ;;  %v806_v41 = vrot.slane %v792_v32, %v2458_v47  ;;  %v822_v42 = vrot.slane %v808_v33, %v2458_v47 }
 0x32b   : > { %v823_v43 = vcombine.low %v799_v39, %v815_v40  ;;  %v825_v44 = vcombine.low %v806_v41, %v822_v42  ;;  %v824_v54 = vcombine.high %v799_v39, %v815_v40  ;;  %v826_v61 = vcombine.high %v806_v41, %v822_v42 }
 0x32d   : > { %v827_v48 = vpack.c.bf16 %v823_v43, %v823_v43  ;;  %v829_v49 = vpack.c.bf16 %v825_v44, %v825_v44  ;;  %v828_v57 = vpack.c.bf16 %v824_v54, %v824_v54  ;;  %v830_v63 = vpack.c.bf16 %v826_v61, %v826_v61 }
 0x32f   : > { %v989_v52 = vsel %vm984_vm2, %v827_v48, 0  ;;  %v1081_v53 = vsel %vm984_vm2, %v829_v49, 0  ;;  %v1035_v60 = vsel %vm984_vm2, %v828_v57, 0  ;;  %v1127_v2 = vsel %vm984_vm2, %v830_v63, 0 }
 0x330   : > { %2031 = vmatpush3.bf16.xpose.msra.mxu0 %v989_v52  ;;  %2043 = vmatpush3.bf16.xpose.msra.mxu1 %v1081_v53 }
 0x331   : > { %2036 = vmatprep.subr.bf16.mxu0 %v2271_v8  ;;  %2054 = vmatprep.subr.bf16.mxu1 %v2271_v8 }
 0x337   : > { %2033 = vmatmul.mubr.msk.bf16.vlgmr.msra.gmra.mrb[4].mxu0 %vm984_vm2, %v675_v58  ;;  %2045 = vmatmul.mubr.msk.bf16.vlgmr.msra.gmra.mrb[0].mxu1 %vm984_vm2, %v677_v59 }
 0x338   : > { %2037 = vmatpush3.bf16.xpose.msra.mxu0 %v1035_v60  ;;  %2038 = vmatprep.mubr.msk.bf16.mxu0 %vm2272_vm1, %v2271_v8 }
 0x339   : > { %2048 = vmatprep.subr.bf16.mxu0 %v2271_v8  ;;  %2056 = vmatprep.mubr.msk.bf16.mxu1 %vm2272_vm1, %v2271_v8 }
 0x33f   : > { %2039 = vmatmul.mubr.msk.bf16.vlgmr.msra.gmra.mrb[8].mxu0 %vm984_vm2, %v676_v1 }
 0x340   : > { %2049 = vmatpush3.bf16.xpose.msra.mxu0 %v1127_v2  ;;  %2050 = vmatprep.mubr.msk.bf16.mxu0 %vm2272_vm1, %v2271_v8 }
 0x341   : > { %2060 = vmatprep.subr.bf16.mxu0 %v2271_v8 }
 0x347   : > { %2051 = vmatmul.mubr.msk.bf16.vlgmr.msra.gmra.mrb[12].mxu0 %vm984_vm2, %v678_v4 }
 0x348   : > { %2062 = vmatprep.mubr.msk.bf16.mxu0 %vm2272_vm1, %v2271_v8 }
 0x40a   : > { %v1025_v6 = vpop.f32.mrb[4].mxu0  ;;  %v1117_v7 = vpop.f32.mrb[0].mxu1 }
 0x40b   : > { %v1026_v9 = vadd.f32 %v1025_v6, %v983_v5  ;;  %v2034_v10 = vpop.f32.mrb[5].mxu0  ;;  %v2046_v11 = vpop.f32.mrb[1].mxu1  ;;  %v1118_v14 = vadd.f32 %v1117_v7, %v983_v5 }
 0x40c   : > { %v1028_v12 = vpop.f32.mrb[6].mxu0  ;;  %v1120_v13 = vpop.f32.mrb[2].mxu1 }
 0x40d   : > { %v2035_v15 = vpop.f32.mrb[7].mxu0  ;;  %v2047_v16 = vpop.f32.mrb[3].mxu1  ;;  %v1169_v17 = vsel %vm984_vm2, %v1026_v9, -inf  ;;  %v1175_v18 = vsel %vm984_vm2, %v1118_v14, -inf }
 0x40e   : > { %1170 = vmax.xlane.f32.xlu1 %v1169_v17 }
 0x412   : > { %1176 = vmax.xlane.f32.xlu1 %v1175_v18  ;;  %v1071_v19 = vpop.f32.mrb[8].mxu0 }
 0x413   : > { %v1072_v20 = vadd.f32 %v1071_v19, %v983_v5  ;;  %v2040_v21 = vpop.f32.mrb[9].mxu0 }
 0x414   : > { %v1074_v22 = vpop.f32.mrb[10].mxu0 }
 0x415   : > { %v2041_v23 = vpop.f32.mrb[11].mxu0  ;;  %v1172_v27 = vsel %vm984_vm2, %v1072_v20, -inf }
 0x416   : > { %1173 = vmax.xlane.f32.xlu0 %v1172_v27 }
 0x41a   : > { %v1163_v28 = vpop.f32.mrb[12].mxu0 }
 0x41b   : > { %v1164_v29 = vadd.f32 %v1163_v28, %v983_v5  ;;  %v2052_v30 = vpop.f32.mrb[13].mxu0 }
 0x41c   : > { %v1166_v31 = vpop.f32.mrb[14].mxu0 }
 0x41d   : > { %v2053_v32 = vpop.f32.mrb[15].mxu0  ;;  %v1178_v33 = vsel %vm984_vm2, %v1164_v29, -inf }
 0x41e   : > { %1179 = vmax.xlane.f32.xlu0 %v1178_v33 }
 0x423   : > { %835 = vrot.lane.b32.xlu1 %v2439_v25, %s2277_s21 }
 0x427   : > { %837 = vrot.lane.b32.xlu1 %v2442_v26, %s2277_s21 }
 0x434   : > { %833 = vrot.lane.b32.xlu0 %v2436_v24, %s2277_s21  ;;  %s2281_s21 = smov 8  }
 0x49b   : > { %v2521_v35 = vpop.xlane.xlu1 %1170 }
 0x49c   : > { %v1181_v36 = vmax.f32 %v2521_v35, -1e+30 }
 0x49e   : > { %v1197_v38 = vsub.f32 %v1026_v9, %v1181_v36 }
 0x49f   : > { %v2526_v39 = vpop.xlane.xlu1 %1176 }
 0x4a0   : > { %v1201_v40 = vmul.f32 1.442695, %v1197_v38  ;;  %v1183_v41 = vmax.f32 %v2526_v39, -1e+30 }
 0x4a2   : > { %v1199_v25 = vsub.f32 %v1118_v14, %v1183_v41  ;;  %2181 = vpow2.f32 %v1201_v40 }
 0x4a3   : > { %v2531_v26 = vpop.xlane.xlu0 %1173  ;;  %v836_v44 = vpop.permute.xlu1 %835 }
 0x4a4   : > { %v1205_v24 = vmul.f32 1.442695, %v1199_v25  ;;  %v1182_v42 = vmax.f32 %v2531_v26, -1e+30  ;;  %v843_v50 = vcombine.low %v832_v34, %v836_v44  ;;  %v844_v51 = vcombine.high %v832_v34, %v836_v44 }
 0x4a6   : > { %2183 = vpow2.f32 %v1205_v24  ;;  %v1198_v43 = vsub.f32 %v1072_v20, %v1182_v42  ;;  %v851_v60 = vrot.slane %v843_v50, %v2448_v37  ;;  %v858_v61 = vrot.slane %v844_v51, %v2448_v37 }
 0x4a7   : > { %v838_v54 = vpop.permute.xlu1 %837 }
 0x4a8   : > { %v1203_v45 = vmul.f32 1.442695, %v1198_v43 }
 0x4aa   : > { %2185 = vpow2.f32 %v1203_v45 }
 0x4ab   : > { %v2536_v46 = vpop.xlane.xlu0 %1179 }
 0x4ac   : > { %v1184_v48 = vmax.f32 %v2536_v46, -1e+30  ;;  %v2539_v49 = vpop.eup %2181 }
 0x4ad   : > { %v1213_v53 = vsel %vm984_vm2, %v2539_v49, 0.0 }
 0x4ae   : > { %v1200_v52 = vsub.f32 %v1164_v29, %v1184_v48  ;;  %1214 = vadd.xlane.f32.xlu0 %v1213_v53 }
 0x4af   : > { %v834_v55 = vpop.permute.xlu0 %833 }
 0x4b0   : > { %v1207_v56 = vmul.f32 1.442695, %v1200_v52  ;;  %v859_v57 = vcombine.low %v834_v55, %v838_v54  ;;  %v860_v58 = vcombine.high %v834_v55, %v838_v54  ;;  %v2545_v59 = vpop.eup %2183  ;;  %v1229_v52 = vpack.c.bf16 %v2539_v49, %v2539_v49 }
 0x4b1   : > { %v1219_v1 = vsel %vm984_vm2, %v2545_v59, 0.0  ;;  %v1231_v49 = vpack.c.bf16 %v2545_v59, %v2545_v59  ;;  %v1187_v59 = vsub.f32 -1e+30, %v1183_v41 }
 0x4b2   : > { %v867_v62 = vrot.slane %v859_v57, %v2448_v37  ;;  %v874_v63 = vrot.slane %v860_v58, %v2448_v37  ;;  %2187 = vpow2.f32 %v1207_v56  ;;  %1220 = vadd.xlane.f32.xlu0 %v1219_v1  ;;  %v1185_v57 = vsub.f32 -1e+30, %v1181_v36 }
 0x4b3   : > { %v1186_v58 = vsub.f32 -1e+30, %v1182_v42 }
 0x4b4   : > { %v875_v2 = vcombine.low %v851_v60, %v867_v62  ;;  %v876_v3 = vcombine.high %v851_v60, %v867_v62  ;;  %v891_v4 = vcombine.low %v858_v61, %v874_v63  ;;  %v892_v5 = vcombine.high %v858_v61, %v874_v63  ;;  %v2186_v6 = vpop.eup %2185 }
 0x4b5   : > { %v1216_v12 = vsel %vm984_vm2, %v2186_v6, 0.0  ;;  %v1230_v53 = vpack.c.bf16 %v2186_v6, %v2186_v6  ;;  %v1189_v60 = vmul.f32 1.442695, %v1185_v57  ;;  %v1191_v61 = vmul.f32 1.442695, %v1186_v58 }
 0x4b6   : > { %v883_v7 = vrot.slane %v875_v2, %v2458_v47  ;;  %v890_v9 = vrot.slane %v876_v3, %v2458_v47  ;;  %v899_v10 = vrot.slane %v891_v4, %v2458_v47  ;;  %v906_v11 = vrot.slane %v892_v5, %v2458_v47  ;;  %1217 = vadd.xlane.f32.xlu1 %v1216_v12 }
 0x4b7   : > { %2189 = vpow2.f32 %v1189_v60  ;;  %v1188_v62 = vsub.f32 -1e+30, %v1184_v48  ;;  %v1193_v63 = vmul.f32 1.442695, %v1187_v59 }
 0x4b8   : > { %v911_v13 = vcombine.low %v883_v7, %v890_v9  ;;  %v1953_v14 = vcombine.high %v883_v7, %v890_v9  ;;  %v927_v15 = vcombine.low %v899_v10, %v906_v11  ;;  %v1954_v16 = vcombine.high %v899_v10, %v906_v11 }
 0x4b9   : > { %2191 = vpow2.f32 %v1191_v61  ;;  %v1195_v1 = vmul.f32 1.442695, %v1188_v62 }
 0x4ba   : > { %v918_v17 = vrot.slane %v911_v13, %v2448_v37  ;;  %v926_v18 = vrot.slane %v1953_v14, %v2448_v37  ;;  %v934_v19 = vrot.slane %v927_v15, %v2448_v37  ;;  %v942_v20 = vrot.slane %v1954_v16, %v2448_v37 }
 0x4bb   : > { %2193 = vpow2.f32 %v1193_v63 }
 0x4bc   : > { %v943_v21 = vcombine.low %v918_v17, %v926_v18  ;;  %v959_v22 = vcombine.low %v934_v19, %v942_v20  ;;  %v944_v23 = vcombine.high %v918_v17, %v926_v18  ;;  %v960_v27 = vcombine.high %v934_v19, %v942_v20  ;;  %v2188_v28 = vpop.eup %2187 }
 0x4bd   : > { %v1222_v29 = vsel %vm984_vm2, %v2188_v28, 0.0  ;;  %v1232_v56 = vpack.c.bf16 %v2188_v28, %v2188_v28  ;;  %2195 = vpow2.f32 %v1195_v1 }
 0x4be   : > { %v951_v30 = vrot.slane %v943_v21, %v2458_v47  ;;  %v967_v31 = vrot.slane %v959_v22, %v2458_v47  ;;  %v958_v32 = vrot.slane %v944_v23, %v2458_v47  ;;  %1223 = vadd.xlane.f32.xlu0 %v1222_v29  ;;  %v974_v33 = vrot.slane %v960_v27, %v2458_v47 }
 0x4c0   : > { %v975_v34 = vcombine.low %v951_v30, %v967_v31  ;;  %v976_v38 = vcombine.high %v951_v30, %v967_v31  ;;  %v977_v40 = vcombine.low %v958_v32, %v974_v33  ;;  %v978_v25 = vcombine.high %v958_v32, %v974_v33 }
 0x4c1   : > { %v2190_v2 = vpop.eup %2189 }
 0x4c2   : > { %v979_v24 = vpack.c.bf16 %v975_v34, %v975_v34  ;;  %v980_v43 = vpack.c.bf16 %v976_v38, %v976_v38  ;;  %v981_v50 = vpack.c.bf16 %v977_v40, %v977_v40  ;;  %v982_v51 = vpack.c.bf16 %v978_v25, %v978_v25 }
 0x4c3   : > { %v2192_v35 = vpop.eup %2191  ;;  %v1209_v3 = vmul.f32 0.0, %v2190_v2 }
 0x4c4   : > { %v1238_v44 = vsel %vm1236_vm3, %v979_v24, 0  ;;  %v1284_v45 = vsel %vm1236_vm3, %v980_v43, 0  ;;  %v1330_v54 = vsel %vm1236_vm3, %v981_v50, 0  ;;  %v1376_v55 = vsel %vm1236_vm3, %v982_v51, 0 }
 0x4c5   : > { %2055 = vmatpush3.bf16.msra.mxu1 %v1238_v44  ;;  %2061 = vmatpush3.bf16.msra.mxu0 %v1284_v45  ;;  %v1210_v42 = vmul.f32 0.0, %v2192_v35  ;;  %v2194_v7 = vpop.eup %2193 }
 0x4c6   : > { %2066 = vmatprep.subr.bf16.mxu1 %v2271_v8  ;;  %2072 = vmatprep.subr.bf16.mxu0 %v2271_v8  ;;  %v1211_v41 = vmul.f32 0.0, %v2194_v7 }
 0x4c7   : > { %v2196_v39 = vpop.eup %2195 }
 0x4c8   : > { %2057 = vmatmul.mubr.msk.bf16.vlgmr.msra.gmra.mrb[4].mxu1 %vm984_vm2, %v1229_v52  ;;  %2063 = vmatmul.mubr.msk.bf16.vlgmr.msra.gmra.mrb[16].mxu0 %vm984_vm2, %v1230_v53  ;;  %v1212_v48 = vmul.f32 0.0, %v2196_v39 }
 0x4c9   : > { %2067 = vmatpush3.bf16.msra.mxu1 %v1330_v54  ;;  %2073 = vmatpush3.bf16.msra.mxu0 %v1376_v55 }
 0x4ca   : > { %2068 = vmatprep.mubr.msk.bf16.mxu1 %vm2272_vm1, %v2271_v8  ;;  %2074 = vmatprep.mubr.msk.bf16.mxu0 %vm2272_vm1, %v2271_v8 }
 0x4cb   : > { %2078 = vmatprep.subr.bf16.mxu1 %v2271_v8  ;;  %2086 = vmatprep.subr.bf16.mxu0 %v2271_v8 }
 0x4d0   : > { %2069 = vmatmul.mubr.msk.bf16.vlgmr.msra.gmra.mrb[8].mxu1 %vm984_vm2, %v1231_v49  ;;  %2075 = vmatmul.mubr.msk.bf16.vlgmr.msra.gmra.mrb[20].mxu0 %vm984_vm2, %v1232_v56 }
 0x4d1   : > { %2082 = vmatprep.mubr.msk.bf16.mxu1 %vm2272_vm1, %v2271_v8  ;;  %2090 = vmatprep.mubr.msk.bf16.mxu0 %vm2272_vm1, %v2271_v8 }
 0x53b   : > { %v1215_v36 = vpop.xlane.xlu0 %1214 }
 0x53c   : > { %v1225_v4 = vadd.f32 %v1215_v36, %v1209_v3 }
 0x53e   : > { %2197 = vrcp.f32 %v1225_v4 }
 0x53f   : > { %v1221_v6 = vpop.xlane.xlu0 %1220 }
 0x540   : > { %v1227_v9 = vadd.f32 %v1221_v6, %v1211_v41  ;;  %v2167_v6 = vld [vmem:[%s2744_s6] sm:$0xff]  }
 0x541   : > { %2079 = vmatpush3.bf16.msra.mxu1 %v2167_v6  ;;  %v1983_v6 = vld [vmem:[%s2749_s11] ss:$0 sm:$0xff] }
 0x542   : > { %2080 = vmatprep.subr.bf16.mxu1 %v2271_v8 }
 0x543   : > { %v1218_v26 = vpop.xlane.xlu1 %1217 }
 0x544   : > { %v1226_v5 = vadd.f32 %v1218_v26, %v1210_v42 }
 0x546   : > { %2199 = vrcp.f32 %v1226_v5 }
 0x547   : > { %2201 = vrcp.f32 %v1227_v9 }
 0x548   : > { %v2198_v13 = vpop.eup %2197 }
 0x54b   : > { %v1224_v46 = vpop.xlane.xlu0 %1223 }
 0x54c   : > { %v1228_v10 = vadd.f32 %v1224_v46, %v1212_v48 }
 0x54e   : > { %2203 = vrcp.f32 %v1228_v10 }
 0x550   : > { %v2200_v18 = vpop.eup %2199 }
 0x551   : > { %v2202_v30 = vpop.eup %2201 }
 0x558   : > { %v2204_v38 = vpop.eup %2203 }
 0x59b   : > { %v1274_v11 = vpop.f32.mrb[4].mxu1  ;;  %v1320_v12 = vpop.f32.mrb[16].mxu0 }
 0x59c   : > { %v1418_v14 = vadd.f32 %v1274_v11, %v1209_v3  ;;  %v1419_v15 = vadd.f32 %v1320_v12, %v1210_v42  ;;  %v2058_v16 = vpop.f32.mrb[5].mxu1  ;;  %v2064_v17 = vpop.f32.mrb[17].mxu0 }
 0x59d   : > { %v1277_v19 = vpop.f32.mrb[6].mxu1  ;;  %v1323_v20 = vpop.f32.mrb[18].mxu0 }
 0x59e   : > { %v1426_v21 = vmul.f32 %v2198_v13, %v1418_v14  ;;  %v1427_v22 = vmul.f32 %v2200_v18, %v1419_v15  ;;  %v2059_v23 = vpop.f32.mrb[7].mxu1  ;;  %v2065_v27 = vpop.f32.mrb[19].mxu0 }
 0x59f   : > { %v1965_v23 = vld [vmem:[%s2745_s7] ss:$0 sm:$0xff] }
 0x5a3   : > { %v1366_v28 = vpop.f32.mrb[8].mxu1  ;;  %v1412_v29 = vpop.f32.mrb[20].mxu0 }
 0x5a4   : > { %v1420_v31 = vadd.f32 %v1366_v28, %v1211_v41  ;;  %v1421_v32 = vadd.f32 %v1412_v29, %v1212_v48  ;;  %v2070_v33 = vpop.f32.mrb[9].mxu1  ;;  %v2076_v34 = vpop.f32.mrb[21].mxu0  ;;  %v2168_v48 = vld [vmem:[%s2744_s6 + $0x8] sm:$0xff]  }
 0x5a5   : > { %v1369_v40 = vpop.f32.mrb[10].mxu1  ;;  %v1415_v25 = vpop.f32.mrb[22].mxu0  ;;  %2081 = vmatpush3.bf16.msra.mxu1 %v2168_v48 }
 0x5a6   : > { %v1428_v24 = vmul.f32 %v2202_v30, %v1420_v31  ;;  %v1429_v43 = vmul.f32 %v2204_v38, %v1421_v32  ;;  %v2071_v44 = vpop.f32.mrb[11].mxu1  ;;  %v2077_v45 = vpop.f32.mrb[23].mxu0  ;;  %2094 = vmatprep.subr.bf16.mxu1 %v2271_v8 }
 0x5a7   : > { %v2171_v44 = vld [vmem:[%s2748_s10] sm:$0xff]   ;;  %v2172_v45 = vld [vmem:[%s2748_s10 + $0x8] sm:$0xff]  }
 0x5a8   : > { %v1430_v50 = vcombine.low %v1426_v21, %v1428_v24  ;;  %v1431_v51 = vcombine.high %v1426_v21, %v1428_v24  ;;  %v1446_v52 = vcombine.low %v1427_v22, %v1429_v43  ;;  %v1447_v53 = vcombine.high %v1427_v22, %v1429_v43  ;;  %v2169_v43 = vld [vmem:[%s2746_s8] sm:$0xff]  }
 0x5a9   : > { %2087 = vmatpush3.bf16.msra.mxu0 %v2169_v43 }
 0x5aa   : > { %v1438_v54 = vrot.slane %v1430_v50, %v2448_v37  ;;  %v1445_v55 = vrot.slane %v1431_v51, %v2448_v37  ;;  %v1454_v49 = vrot.slane %v1446_v52, %v2448_v37  ;;  %v1461_v56 = vrot.slane %v1447_v53, %v2448_v37  ;;  %2088 = vmatprep.subr.bf16.mxu0 %v2271_v8  ;;  %v2173_v50 = vld [vmem:[%s2748_s10 + $0x10] sm:$0xff]   ;;  %v2174_v51 = vld [vmem:[%s2748_s10 + $0x18] sm:$0xff]   ;;  %v2175_v52 = vld [vmem:[%s2748_s10 + $0x20] sm:$0xff]  }
 0x5ab   : > { %v2176_v53 = vld [vmem:[%s2748_s10 + $0x28] sm:$0xff]  }
 0x5ac   : > { %v1462_v57 = vcombine.low %v1438_v54, %v1454_v49  ;;  %v1463_v58 = vcombine.high %v1438_v54, %v1454_v49  ;;  %v1478_v60 = vcombine.low %v1445_v55, %v1461_v56  ;;  %v1479_v61 = vcombine.high %v1445_v55, %v1461_v56 }
 0x5ae   : > { %v1470_v59 = vrot.slane %v1462_v57, %v2458_v47  ;;  %v1477_v62 = vrot.slane %v1463_v58, %v2458_v47  ;;  %v1486_v63 = vrot.slane %v1478_v60, %v2458_v47  ;;  %v1493_v1 = vrot.slane %v1479_v61, %v2458_v47  ;;  %v1969_v57 = vld [vmem:[%s2741_s3] ss:$0 sm:$0xff] }
 0x5af   : > { %v1970_v60 = vld [vmem:[%s2742_s4] ss:$0 sm:$0xff] }
 0x5b0   : > { %v1498_v2 = vcombine.low %v1470_v59, %v1477_v62  ;;  %v1963_v35 = vcombine.high %v1470_v59, %v1477_v62  ;;  %v1514_v36 = vcombine.low %v1486_v63, %v1493_v1  ;;  %v1964_v3 = vcombine.high %v1486_v63, %v1493_v1  ;;  %v2177_v63 = vld [vmem:[%s2748_s10 + $0x30] sm:$0xff]   ;;  %v2178_v1 = vld [vmem:[%s2748_s10 + $0x38] sm:$0xff]  }
 0x5b2   : > { %v1505_v26 = vrot.slane %v1498_v2, %v2448_v37  ;;  %v1513_v42 = vrot.slane %v1963_v35, %v2448_v37  ;;  %v1521_v4 = vrot.slane %v1514_v36, %v2448_v37  ;;  %v1529_v5 = vrot.slane %v1964_v3, %v2448_v37  ;;  %v1971_v2 = vld [vmem:[%s2747_s9] ss:$0 sm:$0xff] }
 0x5b4   : > { %v1531_v7 = vcombine.high %v1505_v26, %v1513_v42  ;;  %v1547_v39 = vcombine.high %v1521_v4, %v1529_v5  ;;  %v1530_v41 = vcombine.low %v1505_v26, %v1513_v42  ;;  %v1546_v46 = vcombine.low %v1521_v4, %v1529_v5 }
 0x5b6   : > { %v1545_v9 = vrot.slane %v1531_v7, %v2458_v47  ;;  %v1561_v10 = vrot.slane %v1547_v39, %v2458_v47  ;;  %v1538_v37 = vrot.slane %v1530_v41, %v2458_v47  ;;  %v1554_v11 = vrot.slane %v1546_v46, %v2458_v47 }
 0x5b8   : > { %v1564_v12 = vcombine.low %v1545_v9, %v1561_v10  ;;  %v1563_v13 = vcombine.high %v1538_v37, %v1554_v11  ;;  %v1565_v14 = vcombine.high %v1545_v9, %v1561_v10  ;;  %v1562_v15 = vcombine.low %v1538_v37, %v1554_v11 }
 0x5ba   : > { %1571 = vrot.lane.b32.xlu0 %v1564_v12, %s2280_s20  ;;  %1567 = vrot.lane.b32.xlu1 %v1563_v13, %s2281_s21  ;;  %s1942_s20 = sshll.u32 %s429_s16, 3  ;;  %s2283_s21 = smov [#allocation3]  }
 0x5bb   : > { %s431_s24 = scalar_lea.vmem [#allocation3], %s1942_s20 }
 0x5bc   : > { %s1879_s30 = sshll.u32 %s431_s24, 4  ;;  %s2697_s30 = int_to_ptr.vmem [resolvable:$true] %s1879_s30 }
 0x5bd   : > { %s2207_s20 = scalar_lea.vmem %s2697_s30, 128 }
 0x5be   : > { %1575 = vrot.lane.b32.xlu1 %v1565_v14, %s2282_s22  ;;  %p2208_p11 = scmp.ne.s32.totalorder %s2697_s30, %s2207_s20  ;;  %s2211_s22 = sshll.u32 %s2283_s21, 4  ;;  %s2212_s22 = int_to_ptr.vmem [resolvable:$false] %s2211_s22 }
 0x5bf   : > { %s2213_s2 = scalar_lea.vmem %s2212_s22, 256  ;;  %p2214_p0 = scmp.lt.s32.totalorder %s2697_s30, %s2212_s22 }
 0x5c0   : > { %p2209_p12 = pnand %p2208_p11, %p2392_p5  ;;  %p2215_p1 = scmp.lt.s32.totalorder %s2213_s2, %s2207_s20 }
 0x5c2   : > { %p2210_p13 = pneg %p2209_p12  ;;  %p2216_p2 = por %p2215_p1, %p2214_p0 }
 0x5c4   : > { %p2217_p3 = pnand %p2216_p2, %p2210_p13 }
 0x62c   : > { %v1568_v16 = vpop.permute.xlu1 %1567  ;;  %v1572_v17 = vpop.permute.xlu0 %1571 }
 0x62d   : > { %v1578_v18 = vsel %vm984_vm2, %v1562_v15, %v1568_v16 }
 0x62e   : > { %v1580_v19 = vsel %vm1579_vm4, %v1578_v18, %v1572_v17 }
 0x630   : > { %v1576_v47 = vpop.permute.xlu1 %1575 }
 0x631   : > { %v1582_v20 = vsel %vm1581_vm5, %v1580_v19, %v1576_v47 }
 0x632   : > { %1583 = vst.msk [vmem:[#allocation2] sm:$0xff] %vm440_vm0, %v1582_v20 }
 0x639   : > { %v1584_v21 = vld [vmem:[#allocation2] sm:$0xff] }
 0x63a   : > { %v1585_v22 = vpack.c.bf16 %v1584_v21, %v1584_v21 }
 0x63c   : > { %2083 = vmatmul.mubr.msk.bf16.vlgmr.msra.gmra.mrb[12].mxu1 %vm440_vm0, %v1585_v22 }
 0x63d   : > { %2110 = vmatprep.mubr.msk.bf16.mxu1 %vm2272_vm1, %v2271_v8  ;;  %2095 = vmatpush3.bf16.msra.mxu1 %v2171_v44 }
 0x63e   : > { %2096 = vmatprep.subr.bf16.mxu1 %v2271_v8 }
 0x641   : > { %2097 = vmatpush3.bf16.msra.mxu1 %v2172_v45 }
 0x642   : > { %2098 = vmatprep.subr.bf16.mxu1 %v2271_v8 }
 0x645   : > { %2099 = vmatpush3.bf16.msra.mxu1 %v2173_v50 }
 0x646   : > { %2100 = vmatprep.subr.bf16.mxu1 %v2271_v8 }
 0x649   : > { %2101 = vmatpush3.bf16.msra.mxu1 %v2174_v51 }
 0x64a   : > { %2102 = vmatprep.subr.bf16.mxu1 %v2271_v8 }
 0x64d   : > { %2103 = vmatpush3.bf16.msra.mxu1 %v2175_v52 }
 0x64e   : > { %2104 = vmatprep.subr.bf16.mxu1 %v2271_v8 }
 0x651   : > { %2105 = vmatpush3.bf16.msra.mxu1 %v2176_v53 }
 0x652   : > { %2106 = vmatprep.subr.bf16.mxu1 %v2271_v8 }
 0x655   : > { %2107 = vmatpush3.bf16.msra.mxu1 %v2177_v63 }
 0x656   : > { %2108 = vmatprep.subr.bf16.mxu1 %v2271_v8 }
 0x659   : > { %2109 = vmatpush3.bf16.msra.mxu1 %v2178_v1 }
 0x70f   : > { %v1646_v27 = vpop.f32.mrb[12].mxu1 }
 0x710   : > { %v1647_v28 = vadd.f32 %v1965_v23, %v1646_v27  ;;  %v2084_v29 = vpop.f32.mrb[13].mxu1 }
 0x711   : > { %v1649_v30 = vpop.f32.mrb[14].mxu1 }
 0x712   : > { %v2632_v31 = vadd.f32 %v1647_v28, %v2407_v0  ;;  %v2085_v32 = vpop.f32.mrb[15].mxu1  ;;  %v2170_v0 = vld [vmem:[%s2746_s8 + $0x8] sm:$0xff]  }
 0x713   : > { %2089 = vmatpush3.bf16.msra.mxu0 %v2170_v0 }
 0x714   : > { %v1655_v33 = vsel %vm440_vm0, %v2632_v31, 0.0 }
 0x715   : > { %1656 = vadd.xlane.f32.xlu1 %v1655_v33 }
 0x7a2   : > { %v1657_v34 = vpop.xlane.xlu1 %1656 }
 0x7a3   : > { %v1658_v38 = vmul.f32 0.03125, %v1657_v34 }
 0x7a5   : > { %v1659_v40 = vsub.f32 %v2632_v31, %v1658_v38 }
 0x7a7   : > { %v1660_v25 = vmul.f32 %v1659_v40, %v1659_v40 }
 0x7a9   : > { %v1661_v24 = vsel %vm440_vm0, %v1660_v25, 0.0 }
 0x7aa   : > { %1662 = vadd.xlane.f32.xlu0 %v1661_v24 }
 0x837   : > { %v1663_v54 = vpop.xlane.xlu0 %1662 }
 0x838   : > { %v1664_v55 = vmul.f32 0.03125, %v1663_v54 }
 0x83a   : > { %v1665_v49 = vadd.f32 1e-05, %v1664_v55 }
 0x83c   : > { %2205 = vrsqrt.f32 %v1665_v49 }
 0x846   : > { %v2206_v56 = vpop.eup %2205 }
 0x847   : > { %v1667_v58 = vmul.f32 %v2206_v56, %v1659_v40 }
 0x849   : > { %v1674_v61 = vmul.f32 %v1969_v57, %v1667_v58 }
 0x84b   : > { %v1681_v59 = vadd.f32 %v1970_v60, %v1674_v61 }
 0x84d   : > { %v1682_v62 = vpack.c.bf16 %v1681_v59, %v1681_v59 }
 0x84f   : > { %2091 = vmatmul.mubr.msk.bf16.vlgmr.msra.gmra.mrb[24].mxu0 %vm440_vm0, %v1682_v62 }
 0x922   : > { %v1743_v35 = vpop.f32.mrb[24].mxu0 }
 0x923   : > { %v1744_v36 = vadd.f32 %v1971_v2, %v1743_v35  ;;  %v2092_v3 = vpop.f32.mrb[25].mxu0 }
 0x924   : > { %v1746_v26 = vpop.f32.mrb[26].mxu0 }
 0x925   : > { %v1749_v42 = vmax.f32 %v1744_v36, 0.0  ;;  %v2093_v4 = vpop.f32.mrb[27].mxu0 }
 0x927   : > { %v1750_v5 = vpack.c.bf16 %v1749_v42, %v1749_v42 }
 0x929   : > { %2111 = vmatmul.mubr.bf16.vlgmr.msra.gmra.mrb[16].mxu1 %v1750_v5 }
 0x9fc   : > { %v1849_v8 = vpop.f32.mrb[16].mxu1 }
 0x9fd   : > { %v1855_v7 = vadd.f32 %v1849_v8, %v2632_v31  ;;  %v2112_v39 = vpop.f32.mrb[17].mxu1 }
 0x9fe   : > { %v1852_v41 = vpop.f32.mrb[18].mxu1 }
 0x9ff   : > { %v1863_v46 = vadd.f32 %v1983_v6, %v1855_v7  ;;  %v2113_v48 = vpop.f32.mrb[19].mxu1 }
 0xa01   : > { %1864 = vst.msk [vmem:[%s431_s24] sm:$0xff] %vm440_vm0, %v1863_v46 }
 0xa02   : > { %2220 = shalt.err (!%p2217_p3)
}
 0xa03   : > { %s2221_s0 = scalar_lea.hbm %s2695_s1, 128  ;;  %s2225_s24 = scalar_lea.hbm %s2751_s13, 256 }
 0xa04   : > { %p2222_p4 = scmp.ne.s32.totalorder %s2695_s1, %s2221_s0  ;;  %p2226_p9 = scmp.lt.u32.totalorder %s2695_s1, %s2751_s13 }
 0xa05   : > { %p2227_p10 = scmp.lt.u32.totalorder %s2225_s24, %s2221_s0  ;;  %p2229_p12 = scmp.lt.u32.totalorder %s2221_s0, %s2695_s1 }
 0xa06   : > { %p2223_p7 = pnand %p2222_p4, %p2392_p5 }
 0xa07   : > { %p2228_p11 = por %p2227_p10, %p2226_p9 }
 0xa08   : > { %p2224_p8 = pneg %p2223_p7 }
 0xa09   : > { %p2230_p13 = por %p2229_p12, %p2228_p11 }
 0xa0b   : > { %p2231_p0 = pnand %p2230_p13, %p2224_p8 }
 0xa0d   : > { %2234 = shalt.err (!%p2231_p0)
}
 0xa0e   : > { %2114 = dma.vmem_to_hbm [thread:$0]  (%p2392_p5), %s2697_s30, 128, %s2695_s1, %s1866_s29  }
 0xa0f PF: > { %p2120_p1 = scmp.ge.s32.totalorder %s2269_s28, 2  ;;  %s1891_s2 = sand.u32 1, %s2257_s25  }
 0xa10   : > { %s1892_s20 = scalar_lea.sflag [#allocation4], %s1891_s2 }
 0xa11   : > { %p2117_p2 = pnand %p2120_p1, %p2396_p6 }
 0xa13   : > { %2252 = dma.done.wait (!%p2117_p2), %s1892_s20, 128  }
 0xa14   : > { %2254 = vsyncadd (!%p2117_p2), %s1892_s20, 4294967168  ;;  %p23_p3 = scmp.ge.s32.totalorder %s2379_s14, 4   ;;  %s2760_s25 = smov %s2261_s26 }
 0xa15   : > { %s2761_s26 = smov %s2265_s27  ;;  %s2762_s27 = smov %s2390_s17 }
 0xa16   : > { %s2763_s28 = smov %s2379_s14  ;;  %25 = sbr.rel (!%p23_p3) target bundleno = 7 (0x7), region = 107 }
 0xa1d   :  { %1897 = vsyncpa [#allocation4], 1 }
 0xa1e   :  { %1899 = vsyncpa [#allocation4 + $0x1], 1 }

// kernel: tpu_custom_call.1
= control target key start
LH: loop header
LB: loop body
LE: loop exit
PB: predicated region body
PF: predicated region fallthrough
CT: control target
= control target key end

     0   :  { %s2738_s0 = inlined_call_operand.vmem [shape: f32[2,8,32], index: 0, kind: input, shape index: {}]   ;;  %s2739_s1 = inlined_call_operand.vmem [shape: f32[1,32], index: 1, kind: input, shape index: {}]   ;;  %s2740_s2 = inlined_call_operand.vmem [shape: f32[1,32], index: 2, kind: input, shape index: {}]   ;;  %s2741_s3 = inlined_call_operand.vmem [shape: f32[1,32], index: 3, kind: input, shape index: {}]   ;;  %s2742_s4 = inlined_call_operand.vmem [shape: f32[1,32], index: 4, kind: input, shape index: {}]   ;;  %s2743_s5 = inlined_call_operand.vmem [shape: bf16[32,96], index: 5, kind: input, shape index: {}]   ;;  %s2744_s6 = inlined_call_operand.vmem [shape: bf16[32,32], index: 6, kind: input, shape index: {}]   ;;  %s2745_s7 = inlined_call_operand.vmem [shape: f32[1,32], index: 7, kind: input, shape index: {}]   ;;  %s2746_s8 = inlined_call_operand.vmem [shape: bf16[32,128], index: 8, kind: input, shape index: {}]   ;;  %s2747_s9 = inlined_call_operand.vmem [shape: f32[1,128], index: 9, kind: input, shape index: {}]   ;;  %s2748_s10 = inlined_call_operand.vmem [shape: bf16[128,32], index: 10, kind: input, shape index: {}]   ;;  %s2749_s11 = inlined_call_operand.vmem [shape: f32[1,32], index: 11, kind: input, shape index: {}]   ;;  %s2750_s12 = inlined_call_operand.vmem [shape: f32[8,8], index: 12, kind: input, shape index: {}]   ;;  %s2751_s13 = inlined_call_operand.hbm [shape: f32[2,8,32], index: 13, kind: output, shape index: {}]  }
   0x1   :  { %2752 = sst [smem:[#allocation6_spill]] %s2738_s0 }
   0x2   :  { %2753 = sst [smem:[#allocation7_spill]] %s2739_s1 }
   0x3   :  { %2754 = sst [smem:[#allocation8_spill]] %s2740_s2 }
   0x4   :  { %18 = vsyncpa [#allocation4], 0 }
   0x5   :  { %20 = vsyncpa [#allocation4 + $0x1], 0  ;;  %s2354_s25 = smov 0   ;;  %s2356_s26 = smov 0  }
   0x6   :  { %s2358_s27 = smov 0   ;;  %s2360_s28 = smov 0  }
   0x7 LB: > { %s2375_s29 = sadd.s32 4294967295, %s2269_s28   ;;  %s1938_s30 = sadd.s32 4294967294, %s2269_s28   ;;  %s2269_s28 = sphi %s2360_s28, %s2763_s28   ;;  %s2265_s27 = sphi %s2358_s27, %s2762_s27   ;;  %s2261_s26 = sphi %s2356_s26, %s2761_s26   ;;  %s2257_s25 = sphi %s2354_s25, %s2760_s25  }
   0x8   : > { %s2379_s14 = sadd.s32 1, %s2269_s28   ;;  %s311_s15 = sadd.s32 1, %s2265_s27 }
   0x9   : > { %s308_s16 = ssub.s32 %s2269_s28, %s2379_s14  ;;  %p321_p0 = scmp.ne.s32.totalorder %s2265_s27, %s2261_s26 }
   0xa   : > { %p309_p1 = scmp.eq.s32.totalorder %s308_s16, 0  ;;  %p322_p2 = scmp.eq.s32.totalorder %s2375_s29, 1 }
   0xb   : > { %p327_p3 = scmp.ne.s32.totalorder %s2261_s26, %s2257_s25  ;;  %p328_p4 = scmp.eq.s32.totalorder %s1938_s30, 1 }
   0xc   : > { %s2390_s17 = scalar_select %p309_p1, %s2265_s27, %s311_s15  }
   0xd   : > { %p2392_p5 = por %p322_p2, %p321_p0  ;;  %p2396_p6 = por %p328_p4, %p327_p3 }
   0xe   : > { %p1941_p7 = scmp.ge.s32.totalorder %s2269_s28, 1  ;;  %p389_p8 = scmp.lt.s32.totalorder %s2269_s28, 3 }
  0x10   : > { %p390_p9 = pnand %p1941_p7, %p389_p8 }
  0x11   : > { %p432_p10 = scmp.lt.s32.totalorder (!%p390_p9), %s2375_s29, 1  ;;  %vm440_vm0 = vcmask (!%p390_p9), 261120   ;;  %s2757_s0 = sld [smem:[#allocation6_spill]] (!%p390_p9)  ;;  %v2165_v7 = vld [vmem:[%s2743_s5] sm:$0xff] (!%p390_p9)   ;;  %v2271_v8 = vmov (!%p390_p9), 0.0   ;;  %vm2272_vm1 = vmmov (!%p390_p9), 0   ;;  %v544_v29 = vlaneseq (!%p390_p9) }
  0x12   : > { %393 = sbr.rel (%p390_p9) target bundleno = 2575 (0xa0f), region = 72  ;;  %2022 = vmatprep.subr.bf16.mxu0 (!%p390_p9), %v2271_v8  ;;  %2026 = vmatprep.mubr.msk.bf16.mxu0 (!%p390_p9), %vm2272_vm1, %v2271_v8  ;;  %v2166_v9 = vld [vmem:[%s2743_s5 + $0x8] sm:$0xff] (!%p390_p9)   ;;  %s2758_s1 = sld [smem:[#allocation7_spill]] (!%p390_p9)  ;;  %v2278_v27 = vmov (!%p390_p9), 1983009808   ;;  %vm984_vm2 = vcmask (!%p390_p9), 64512  }
  0x13   : > { %2023 = vmatpush3.bf16.msra.mxu0 (!%p390_p9), %v2165_v7  ;;  %2042 = vmatprep.subr.bf16.mxu1 (!%p390_p9), %v2271_v8  ;;  %s2759_s2 = sld [smem:[#allocation8_spill]] (!%p390_p9)  ;;  %s2273_s30 = smov (!%p390_p9), 104   ;;  %v542_v28 = vunpack.c.l.s4 (!%p390_p9), %v2278_v27  ;;  %v545_v31 = vshrl.u32 (!%p390_p9), %v544_v29, 7  ;;  %v2279_v33 = vmov (!%p390_p9), 1934713408   ;;  %vm1236_vm3 = vcmask (!%p390_p9), 1043456  }
  0x14   : > { %2024 = vmatprep.subr.bf16.mxu0 (!%p390_p9), %v2271_v8  ;;  %2044 = vmatprep.mubr.msk.bf16.mxu1 (!%p390_p9), %vm2272_vm1, %v2271_v8  ;;  %s2274_s15 = smov (!%p390_p9), 120   ;;  %s2275_s16 = smov (!%p390_p9), 112   ;;  %v574_v34 = vunpack.c.l.s4 (!%p390_p9), %v2279_v33  ;;  %vm1579_vm4 = vcmask (!%p390_p9), 130048   ;;  %vm1581_vm5 = vcmask (!%p390_p9), 195584  }
  0x15   : > { %v543_v30 = vunpack.c.0.s8 (!%p390_p9), %v542_v28  ;;  %s2282_s22 = smov (!%p390_p9), 24   ;;  %s1985_s23 = sshll.u32 (!%p390_p9), %s2375_s29, 7 }
  0x16   : > { %v575_v41 = vunpack.c.0.s8 (!%p390_p9), %v574_v34 }
  0x17   : > { %2025 = vmatpush3.bf16.msra.mxu0 (!%p390_p9), %v2166_v9  ;;  %v2448_v37 = vsub.s32 (!%p390_p9), %v543_v30, %v545_v31 }
  0x18   : > { %2030 = vmatprep.subr.bf16.mxu0 (!%p390_p9), %v2271_v8  ;;  %v1944_v14 = vld [vmem:[%s2758_s1] ss:$0 sm:$0xff] (!%p390_p9)  ;;  %v2458_v47 = vsub.s32 (!%p390_p9), %v575_v41, %v545_v31  ;;  %s2695_s1 = scalar_lea.hbm (!%p390_p9), %s2751_s13, %s1985_s23 }
  0x19   : > { %s433_s20 = scalar_select %p432_p10, %s2375_s29, 1  ;;  %v1945_v16 = vld [vmem:[%s2759_s2] ss:$0 sm:$0xff] }
  0x1b   : > { %s1943_s21 = sshll.u32 %s433_s20, 3  ;;  %s2276_s20 = smov 96  }
  0x1c   : > { %s435_s24 = scalar_lea.vmem %s2757_s0, %s1943_s21  ;;  %s2277_s21 = smov 64  }
  0x1d   : > { %v2407_v0 = vld [vmem:[%s435_s24] sm:$0xff] }
  0x1e   : > { %v441_v1 = vsel %vm440_vm0, %v2407_v0, 0.0 }
  0x1f   : > { %442 = vadd.xlane.f32.xlu0 %v441_v1 }
  0xac   : > { %v443_v2 = vpop.xlane.xlu0 %442 }
  0xad   : > { %v445_v3 = vmul.f32 0.03125, %v443_v2 }
  0xaf   : > { %v446_v4 = vsub.f32 %v2407_v0, %v445_v3 }
  0xb1   : > { %v447_v5 = vmul.f32 %v446_v4, %v446_v4 }
  0xb3   : > { %v448_v6 = vsel %vm440_vm0, %v447_v5, 0.0 }
  0xb4   : > { %449 = vadd.xlane.f32.xlu0 %v448_v6 }
 0x141   : > { %v450_v10 = vpop.xlane.xlu0 %449 }
 0x142   : > { %v451_v11 = vmul.f32 0.03125, %v450_v10 }
 0x144   : > { %v452_v12 = vadd.f32 1e-05, %v451_v11 }
 0x146   : > { %2179 = vrsqrt.f32 %v452_v12 }
 0x150   : > { %v2180_v13 = vpop.eup %2179 }
 0x151   : > { %v454_v15 = vmul.f32 %v2180_v13, %v446_v4 }
 0x153   : > { %v461_v17 = vmul.f32 %v1944_v14, %v454_v15 }
 0x155   : > { %v468_v18 = vadd.f32 %v1945_v16, %v461_v17 }
 0x157   : > { %v469_v19 = vpack.c.bf16 %v468_v18, %v468_v18 }
 0x159   : > { %2027 = vmatmul.mubr.msk.bf16.vlgmr.msra.gmra.mrb[0].mxu0 %vm440_vm0, %v469_v19 }
 0x15a   : > { %2032 = vmatprep.mubr.msk.bf16.mxu0 %vm2272_vm1, %v2271_v8 }
 0x22c   : > { %v523_v20 = vpop.f32.mrb[0].mxu0 }
 0x22d   : > { %536 = vrot.lane.b32.xlu0 %v523_v20, %s2273_s30  ;;  %530 = vrot.lane.b32.xlu1 %v523_v20, %s2274_s15  ;;  %v2028_v21 = vpop.f32.mrb[1].mxu0 }
 0x22e   : > { %v526_v22 = vpop.f32.mrb[2].mxu0 }
 0x22f   : > { %v2029_v23 = vpop.f32.mrb[3].mxu0 }
 0x231   : > { %533 = vrot.lane.b32.xlu1 %v523_v20, %s2275_s16  ;;  %s429_s16 = sand.u32 1, %s2261_s26  }
 0x232   : > { %s1866_s29 = scalar_lea.sflag [#allocation4], %s429_s16 }
 0x235   : > { %679 = vrot.lane.b32.xlu1 %v523_v20, %s2276_s20 }
 0x29f   : > { %v2436_v24 = vpop.permute.xlu1 %530  ;;  %v2442_v26 = vpop.permute.xlu0 %536 }
 0x2a0   : > { %681 = vrot.lane.b32.xlu1 %v2436_v24, %s2276_s20  ;;  %v555_v38 = vcombine.low %v2436_v24, %v2442_v26  ;;  %v556_v39 = vcombine.high %v2436_v24, %v2442_v26 }
 0x2a2   : > { %v563_v44 = vrot.slane %v555_v38, %v2448_v37  ;;  %v570_v45 = vrot.slane %v556_v39, %v2448_v37 }
 0x2a3   : > { %v2439_v25 = vpop.permute.xlu1 %533 }
 0x2a4   : > { %683 = vrot.lane.b32.xlu1 %v2439_v25, %s2276_s20  ;;  %v539_v35 = vcombine.low %v523_v20, %v2439_v25  ;;  %v540_v36 = vcombine.high %v523_v20, %v2439_v25 }
 0x2a6   : > { %v547_v42 = vrot.slane %v539_v35, %v2448_v37  ;;  %v554_v43 = vrot.slane %v540_v36, %v2448_v37 }
 0x2a7   : > { %v680_v32 = vpop.permute.xlu1 %679 }
 0x2a8   : > { %685 = vrot.lane.b32.xlu1 %v2442_v26, %s2276_s20  ;;  %v571_v48 = vcombine.low %v547_v42, %v563_v44  ;;  %v572_v49 = vcombine.high %v547_v42, %v563_v44  ;;  %v587_v50 = vcombine.low %v554_v43, %v570_v45  ;;  %v588_v51 = vcombine.high %v554_v43, %v570_v45  ;;  %s2280_s20 = smov 16  }
 0x2aa   : > { %v579_v57 = vrot.slane %v571_v48, %v2458_v47  ;;  %v586_v58 = vrot.slane %v572_v49, %v2458_v47  ;;  %v595_v59 = vrot.slane %v587_v50, %v2458_v47  ;;  %v602_v60 = vrot.slane %v588_v51, %v2458_v47 }
 0x2ac   : > { %831 = vrot.lane.b32.xlu1 %v523_v20, %s2277_s21  ;;  %v607_v6 = vcombine.low %v579_v57, %v586_v58  ;;  %v1949_v7 = vcombine.high %v579_v57, %v586_v58  ;;  %v623_v9 = vcombine.low %v595_v59, %v602_v60  ;;  %v1950_v10 = vcombine.high %v595_v59, %v602_v60 }
 0x2ae   : > { %v614_v19 = vrot.slane %v607_v6, %v2448_v37  ;;  %v622_v20 = vrot.slane %v1949_v7, %v2448_v37  ;;  %v630_v21 = vrot.slane %v623_v9, %v2448_v37  ;;  %v638_v22 = vrot.slane %v1950_v10, %v2448_v37 }
 0x2b0   : > { %v639_v34 = vcombine.low %v614_v19, %v622_v20  ;;  %v655_v35 = vcombine.low %v630_v21, %v638_v22  ;;  %v640_v36 = vcombine.high %v614_v19, %v622_v20  ;;  %v656_v38 = vcombine.high %v630_v21, %v638_v22 }
 0x2b2   : > { %v647_v45 = vrot.slane %v639_v34, %v2458_v47  ;;  %v654_v50 = vrot.slane %v640_v36, %v2458_v47  ;;  %v670_v51 = vrot.slane %v656_v38, %v2458_v47 }
 0x312   : > { %v682_v40 = vpop.permute.xlu1 %681 }
 0x316   : > { %v684_v46 = vpop.permute.xlu1 %683 }
 0x317   : > { %v691_v52 = vcombine.low %v680_v32, %v684_v46  ;;  %v692_v53 = vcombine.high %v680_v32, %v684_v46  ;;  %v663_v46 = vrot.slane %v655_v35, %v2458_v47 }
 0x319   : > { %v699_v61 = vrot.slane %v691_v52, %v2448_v37  ;;  %v706_v62 = vrot.slane %v692_v53, %v2448_v37 }
 0x31a   : > { %v686_v54 = vpop.permute.xlu1 %685 }
 0x31b   : > { %v707_v55 = vcombine.low %v682_v40, %v686_v54  ;;  %v708_v56 = vcombine.high %v682_v40, %v686_v54 }
 0x31d   : > { %v715_v63 = vrot.slane %v707_v55, %v2448_v37  ;;  %v722_v1 = vrot.slane %v708_v56, %v2448_v37  ;;  %v671_v55 = vcombine.low %v647_v45, %v663_v46  ;;  %v673_v56 = vcombine.low %v654_v50, %v670_v51 }
 0x31e   : > { %v832_v34 = vpop.permute.xlu1 %831 }
 0x31f   : > { %v723_v2 = vcombine.low %v699_v61, %v715_v63  ;;  %v724_v3 = vcombine.high %v699_v61, %v715_v63  ;;  %v739_v4 = vcombine.low %v706_v62, %v722_v1  ;;  %v740_v5 = vcombine.high %v706_v62, %v722_v1 }
 0x320   : > { %v675_v58 = vpack.c.bf16 %v671_v55, %v671_v55  ;;  %v677_v59 = vpack.c.bf16 %v673_v56, %v673_v56  ;;  %v672_v62 = vcombine.high %v647_v45, %v663_v46 }
 0x321   : > { %v731_v11 = vrot.slane %v723_v2, %v2458_v47  ;;  %v738_v12 = vrot.slane %v724_v3, %v2458_v47  ;;  %v747_v13 = vrot.slane %v739_v4, %v2458_v47  ;;  %v754_v14 = vrot.slane %v740_v5, %v2458_v47  ;;  %v983_v5 = vld [vmem:[%s2750_s12] sm:$0xff] }
 0x322   : > { %v676_v1 = vpack.c.bf16 %v672_v62, %v672_v62  ;;  %v674_v3 = vcombine.high %v654_v50, %v670_v51 }
 0x323   : > { %v759_v15 = vcombine.low %v731_v11, %v738_v12  ;;  %v1951_v16 = vcombine.high %v731_v11, %v738_v12  ;;  %v775_v17 = vcombine.low %v747_v13, %v754_v14  ;;  %v1952_v18 = vcombine.high %v747_v13, %v754_v14 }
 0x324   : > { %v678_v4 = vpack.c.bf16 %v674_v3, %v674_v3 }
 0x325   : > { %v766_v23 = vrot.slane %v759_v15, %v2448_v37  ;;  %v774_v27 = vrot.slane %v1951_v16, %v2448_v37  ;;  %v782_v28 = vrot.slane %v775_v17, %v2448_v37  ;;  %v790_v29 = vrot.slane %v1952_v18, %v2448_v37 }
 0x327   : > { %v791_v30 = vcombine.low %v766_v23, %v774_v27  ;;  %v807_v31 = vcombine.low %v782_v28, %v790_v29  ;;  %v792_v32 = vcombine.high %v766_v23, %v774_v27  ;;  %v808_v33 = vcombine.high %v782_v28, %v790_v29 }
 0x329   : > { %v799_v39 = vrot.slane %v791_v30, %v2458_v47  ;;  %v815_v40 = vrot.slane %v807_v31, %v2458_v47  ;;  %v806_v41 = vrot.slane %v792_v32, %v2458_v47  ;;  %v822_v42 = vrot.slane %v808_v33, %v2458_v47 }
 0x32b   : > { %v823_v43 = vcombine.low %v799_v39, %v815_v40  ;;  %v825_v44 = vcombine.low %v806_v41, %v822_v42  ;;  %v824_v54 = vcombine.high %v799_v39, %v815_v40  ;;  %v826_v61 = vcombine.high %v806_v41, %v822_v42 }
 0x32d   : > { %v827_v48 = vpack.c.bf16 %v823_v43, %v823_v43  ;;  %v829_v49 = vpack.c.bf16 %v825_v44, %v825_v44  ;;  %v828_v57 = vpack.c.bf16 %v824_v54, %v824_v54  ;;  %v830_v63 = vpack.c.bf16 %v826_v61, %v826_v61 }
 0x32f   : > { %v989_v52 = vsel %vm984_vm2, %v827_v48, 0  ;;  %v1081_v53 = vsel %vm984_vm2, %v829_v49, 0  ;;  %v1035_v60 = vsel %vm984_vm2, %v828_v57, 0  ;;  %v1127_v2 = vsel %vm984_vm2, %v830_v63, 0 }
 0x330   : > { %2031 = vmatpush3.bf16.xpose.msra.mxu0 %v989_v52  ;;  %2043 = vmatpush3.bf16.xpose.msra.mxu1 %v1081_v53 }
 0x331   : > { %2036 = vmatprep.subr.bf16.mxu0 %v2271_v8  ;;  %2054 = vmatprep.subr.bf16.mxu1 %v2271_v8 }
 0x337   : > { %2033 = vmatmul.mubr.msk.bf16.vlgmr.msra.gmra.mrb[4].mxu0 %vm984_vm2, %v675_v58  ;;  %2045 = vmatmul.mubr.msk.bf16.vlgmr.msra.gmra.mrb[0].mxu1 %vm984_vm2, %v677_v59 }
 0x338   : > { %2037 = vmatpush3.bf16.xpose.msra.mxu0 %v1035_v60  ;;  %2038 = vmatprep.mubr.msk.bf16.mxu0 %vm2272_vm1, %v2271_v8 }
 0x339   : > { %2048 = vmatprep.subr.bf16.mxu0 %v2271_v8  ;;  %2056 = vmatprep.mubr.msk.bf16.mxu1 %vm2272_vm1, %v2271_v8 }
 0x33f   : > { %2039 = vmatmul.mubr.msk.bf16.vlgmr.msra.gmra.mrb[8].mxu0 %vm984_vm2, %v676_v1 }
 0x340   : > { %2049 = vmatpush3.bf16.xpose.msra.mxu0 %v1127_v2  ;;  %2050 = vmatprep.mubr.msk.bf16.mxu0 %vm2272_vm1, %v2271_v8 }
 0x341   : > { %2060 = vmatprep.subr.bf16.mxu0 %v2271_v8 }
 0x347   : > { %2051 = vmatmul.mubr.msk.bf16.vlgmr.msra.gmra.mrb[12].mxu0 %vm984_vm2, %v678_v4 }
 0x348   : > { %2062 = vmatprep.mubr.msk.bf16.mxu0 %vm2272_vm1, %v2271_v8 }
 0x40a   : > { %v1025_v6 = vpop.f32.mrb[4].mxu0  ;;  %v1117_v7 = vpop.f32.mrb[0].mxu1 }
 0x40b   : > { %v1026_v9 = vadd.f32 %v1025_v6, %v983_v5  ;;  %v2034_v10 = vpop.f32.mrb[5].mxu0  ;;  %v2046_v11 = vpop.f32.mrb[1].mxu1  ;;  %v1118_v14 = vadd.f32 %v1117_v7, %v983_v5 }
 0x40c   : > { %v1028_v12 = vpop.f32.mrb[6].mxu0  ;;  %v1120_v13 = vpop.f32.mrb[2].mxu1 }
 0x40d   : > { %v2035_v15 = vpop.f32.mrb[7].mxu0  ;;  %v2047_v16 = vpop.f32.mrb[3].mxu1  ;;  %v1169_v17 = vsel %vm984_vm2, %v1026_v9, -inf  ;;  %v1175_v18 = vsel %vm984_vm2, %v1118_v14, -inf }
 0x40e   : > { %1170 = vmax.xlane.f32.xlu1 %v1169_v17 }
 0x412   : > { %1176 = vmax.xlane.f32.xlu1 %v1175_v18  ;;  %v1071_v19 = vpop.f32.mrb[8].mxu0 }
 0x413   : > { %v1072_v20 = vadd.f32 %v1071_v19, %v983_v5  ;;  %v2040_v21 = vpop.f32.mrb[9].mxu0 }
 0x414   : > { %v1074_v22 = vpop.f32.mrb[10].mxu0 }
 0x415   : > { %v2041_v23 = vpop.f32.mrb[11].mxu0  ;;  %v1172_v27 = vsel %vm984_vm2, %v1072_v20, -inf }
 0x416   : > { %1173 = vmax.xlane.f32.xlu0 %v1172_v27 }
 0x41a   : > { %v1163_v28 = vpop.f32.mrb[12].mxu0 }
 0x41b   : > { %v1164_v29 = vadd.f32 %v1163_v28, %v983_v5  ;;  %v2052_v30 = vpop.f32.mrb[13].mxu0 }
 0x41c   : > { %v1166_v31 = vpop.f32.mrb[14].mxu0 }
 0x41d   : > { %v2053_v32 = vpop.f32.mrb[15].mxu0  ;;  %v1178_v33 = vsel %vm984_vm2, %v1164_v29, -inf }
 0x41e   : > { %1179 = vmax.xlane.f32.xlu0 %v1178_v33 }
 0x423   : > { %835 = vrot.lane.b32.xlu1 %v2439_v25, %s2277_s21 }
 0x427   : > { %837 = vrot.lane.b32.xlu1 %v2442_v26, %s2277_s21 }
 0x434   : > { %833 = vrot.lane.b32.xlu0 %v2436_v24, %s2277_s21  ;;  %s2281_s21 = smov 8  }
 0x49b   : > { %v2521_v35 = vpop.xlane.xlu1 %1170 }
 0x49c   : > { %v1181_v36 = vmax.f32 %v2521_v35, -1e+30 }
 0x49e   : > { %v1197_v38 = vsub.f32 %v1026_v9, %v1181_v36 }
 0x49f   : > { %v2526_v39 = vpop.xlane.xlu1 %1176 }
 0x4a0   : > { %v1201_v40 = vmul.f32 1.442695, %v1197_v38  ;;  %v1183_v41 = vmax.f32 %v2526_v39, -1e+30 }
 0x4a2   : > { %v1199_v25 = vsub.f32 %v1118_v14, %v1183_v41  ;;  %2181 = vpow2.f32 %v1201_v40 }
 0x4a3   : > { %v2531_v26 = vpop.xlane.xlu0 %1173  ;;  %v836_v44 = vpop.permute.xlu1 %835 }
 0x4a4   : > { %v1205_v24 = vmul.f32 1.442695, %v1199_v25  ;;  %v1182_v42 = vmax.f32 %v2531_v26, -1e+30  ;;  %v843_v50 = vcombine.low %v832_v34, %v836_v44  ;;  %v844_v51 = vcombine.high %v832_v34, %v836_v44 }
 0x4a6   : > { %2183 = vpow2.f32 %v1205_v24  ;;  %v1198_v43 = vsub.f32 %v1072_v20, %v1182_v42  ;;  %v851_v60 = vrot.slane %v843_v50, %v2448_v37  ;;  %v858_v61 = vrot.slane %v844_v51, %v2448_v37 }
 0x4a7   : > { %v838_v54 = vpop.permute.xlu1 %837 }
 0x4a8   : > { %v1203_v45 = vmul.f32 1.442695, %v1198_v43 }
 0x4aa   : > { %2185 = vpow2.f32 %v1203_v45 }
 0x4ab   : > { %v2536_v46 = vpop.xlane.xlu0 %1179 }
 0x4ac   : > { %v1184_v48 = vmax.f32 %v2536_v46, -1e+30  ;;  %v2539_v49 = vpop.eup %2181 }
 0x4ad   : > { %v1213_v53 = vsel %vm984_vm2, %v2539_v49, 0.0 }
 0x4ae   : > { %v1200_v52 = vsub.f32 %v1164_v29, %v1184_v48  ;;  %1214 = vadd.xlane.f32.xlu0 %v1213_v53 }
 0x4af   : > { %v834_v55 = vpop.permute.xlu0 %833 }
 0x4b0   : > { %v1207_v56 = vmul.f32 1.442695, %v1200_v52  ;;  %v859_v57 = vcombine.low %v834_v55, %v838_v54  ;;  %v860_v58 = vcombine.high %v834_v55, %v838_v54  ;;  %v2545_v59 = vpop.eup %2183  ;;  %v1229_v52 = vpack.c.bf16 %v2539_v49, %v2539_v49 }
 0x4b1   : > { %v1219_v1 = vsel %vm984_vm2, %v2545_v59, 0.0  ;;  %v1231_v49 = vpack.c.bf16 %v2545_v59, %v2545_v59  ;;  %v1187_v59 = vsub.f32 -1e+30, %v1183_v41 }
 0x4b2   : > { %v867_v62 = vrot.slane %v859_v57, %v2448_v37  ;;  %v874_v63 = vrot.slane %v860_v58, %v2448_v37  ;;  %2187 = vpow2.f32 %v1207_v56  ;;  %1220 = vadd.xlane.f32.xlu0 %v1219_v1  ;;  %v1185_v57 = vsub.f32 -1e+30, %v1181_v36 }
 0x4b3   : > { %v1186_v58 = vsub.f32 -1e+30, %v1182_v42 }
 0x4b4   : > { %v875_v2 = vcombine.low %v851_v60, %v867_v62  ;;  %v876_v3 = vcombine.high %v851_v60, %v867_v62  ;;  %v891_v4 = vcombine.low %v858_v61, %v874_v63  ;;  %v892_v5 = vcombine.high %v858_v61, %v874_v63  ;;  %v2186_v6 = vpop.eup %2185 }
 0x4b5   : > { %v1216_v12 = vsel %vm984_vm2, %v2186_v6, 0.0  ;;  %v1230_v53 = vpack.c.bf16 %v2186_v6, %v2186_v6  ;;  %v1189_v60 = vmul.f32 1.442695, %v1185_v57  ;;  %v1191_v61 = vmul.f32 1.442695, %v1186_v58 }
 0x4b6   : > { %v883_v7 = vrot.slane %v875_v2, %v2458_v47  ;;  %v890_v9 = vrot.slane %v876_v3, %v2458_v47  ;;  %v899_v10 = vrot.slane %v891_v4, %v2458_v47  ;;  %v906_v11 = vrot.slane %v892_v5, %v2458_v47  ;;  %1217 = vadd.xlane.f32.xlu1 %v1216_v12 }
 0x4b7   : > { %2189 = vpow2.f32 %v1189_v60  ;;  %v1188_v62 = vsub.f32 -1e+30, %v1184_v48  ;;  %v1193_v63 = vmul.f32 1.442695, %v1187_v59 }
 0x4b8   : > { %v911_v13 = vcombine.low %v883_v7, %v890_v9  ;;  %v1953_v14 = vcombine.high %v883_v7, %v890_v9  ;;  %v927_v15 = vcombine.low %v899_v10, %v906_v11  ;;  %v1954_v16 = vcombine.high %v899_v10, %v906_v11 }
 0x4b9   : > { %2191 = vpow2.f32 %v1191_v61  ;;  %v1195_v1 = vmul.f32 1.442695, %v1188_v62 }
 0x4ba   : > { %v918_v17 = vrot.slane %v911_v13, %v2448_v37  ;;  %v926_v18 = vrot.slane %v1953_v14, %v2448_v37  ;;  %v934_v19 = vrot.slane %v927_v15, %v2448_v37  ;;  %v942_v20 = vrot.slane %v1954_v16, %v2448_v37 }
 0x4bb   : > { %2193 = vpow2.f32 %v1193_v63 }
 0x4bc   : > { %v943_v21 = vcombine.low %v918_v17, %v926_v18  ;;  %v959_v22 = vcombine.low %v934_v19, %v942_v20  ;;  %v944_v23 = vcombine.high %v918_v17, %v926_v18  ;;  %v960_v27 = vcombine.high %v934_v19, %v942_v20  ;;  %v2188_v28 = vpop.eup %2187 }
 0x4bd   : > { %v1222_v29 = vsel %vm984_vm2, %v2188_v28, 0.0  ;;  %v1232_v56 = vpack.c.bf16 %v2188_v28, %v2188_v28  ;;  %2195 = vpow2.f32 %v1195_v1 }
 0x4be   : > { %v951_v30 = vrot.slane %v943_v21, %v2458_v47  ;;  %v967_v31 = vrot.slane %v959_v22, %v2458_v47  ;;  %v958_v32 = vrot.slane %v944_v23, %v2458_v47  ;;  %1223 = vadd.xlane.f32.xlu0 %v1222_v29  ;;  %v974_v33 = vrot.slane %v960_v27, %v2458_v47 }
 0x4c0   : > { %v975_v34 = vcombine.low %v951_v30, %v967_v31  ;;  %v976_v38 = vcombine.high %v951_v30, %v967_v31  ;;  %v977_v40 = vcombine.low %v958_v32, %v974_v33  ;;  %v978_v25 = vcombine.high %v958_v32, %v974_v33 }
 0x4c1   : > { %v2190_v2 = vpop.eup %2189 }
 0x4c2   : > { %v979_v24 = vpack.c.bf16 %v975_v34, %v975_v34  ;;  %v980_v43 = vpack.c.bf16 %v976_v38, %v976_v38  ;;  %v981_v50 = vpack.c.bf16 %v977_v40, %v977_v40  ;;  %v982_v51 = vpack.c.bf16 %v978_v25, %v978_v25 }
 0x4c3   : > { %v2192_v35 = vpop.eup %2191  ;;  %v1209_v3 = vmul.f32 0.0, %v2190_v2 }
 0x4c4   : > { %v1238_v44 = vsel %vm1236_vm3, %v979_v24, 0  ;;  %v1284_v45 = vsel %vm1236_vm3, %v980_v43, 0  ;;  %v1330_v54 = vsel %vm1236_vm3, %v981_v50, 0  ;;  %v1376_v55 = vsel %vm1236_vm3, %v982_v51, 0 }
 0x4c5   : > { %2055 = vmatpush3.bf16.msra.mxu1 %v1238_v44  ;;  %2061 = vmatpush3.bf16.msra.mxu0 %v1284_v45  ;;  %v1210_v42 = vmul.f32 0.0, %v2192_v35  ;;  %v2194_v7 = vpop.eup %2193 }
 0x4c6   : > { %2066 = vmatprep.subr.bf16.mxu1 %v2271_v8  ;;  %2072 = vmatprep.subr.bf16.mxu0 %v2271_v8  ;;  %v1211_v41 = vmul.f32 0.0, %v2194_v7 }
 0x4c7   : > { %v2196_v39 = vpop.eup %2195 }
 0x4c8   : > { %2057 = vmatmul.mubr.msk.bf16.vlgmr.msra.gmra.mrb[4].mxu1 %vm984_vm2, %v1229_v52  ;;  %2063 = vmatmul.mubr.msk.bf16.vlgmr.msra.gmra.mrb[16].mxu0 %vm984_vm2, %v1230_v53  ;;  %v1212_v48 = vmul.f32 0.0, %v2196_v39 }
 0x4c9   : > { %2067 = vmatpush3.bf16.msra.mxu1 %v1330_v54  ;;  %2073 = vmatpush3.bf16.msra.mxu0 %v1376_v55 }
 0x4ca   : > { %2068 = vmatprep.mubr.msk.bf16.mxu1 %vm2272_vm1, %v2271_v8  ;;  %2074 = vmatprep.mubr.msk.bf16.mxu0 %vm2272_vm1, %v2271_v8 }
 0x4cb   : > { %2078 = vmatprep.subr.bf16.mxu1 %v2271_v8  ;;  %2086 = vmatprep.subr.bf16.mxu0 %v2271_v8 }
 0x4d0   : > { %2069 = vmatmul.mubr.msk.bf16.vlgmr.msra.gmra.mrb[8].mxu1 %vm984_vm2, %v1231_v49  ;;  %2075 = vmatmul.mubr.msk.bf16.vlgmr.msra.gmra.mrb[20].mxu0 %vm984_vm2, %v1232_v56 }
 0x4d1   : > { %2082 = vmatprep.mubr.msk.bf16.mxu1 %vm2272_vm1, %v2271_v8  ;;  %2090 = vmatprep.mubr.msk.bf16.mxu0 %vm2272_vm1, %v2271_v8 }
 0x53b   : > { %v1215_v36 = vpop.xlane.xlu0 %1214 }
 0x53c   : > { %v1225_v4 = vadd.f32 %v1215_v36, %v1209_v3 }
 0x53e   : > { %2197 = vrcp.f32 %v1225_v4 }
 0x53f   : > { %v1221_v6 = vpop.xlane.xlu0 %1220 }
 0x540   : > { %v1227_v9 = vadd.f32 %v1221_v6, %v1211_v41  ;;  %v2167_v6 = vld [vmem:[%s2744_s6] sm:$0xff]  }
 0x541   : > { %2079 = vmatpush3.bf16.msra.mxu1 %v2167_v6  ;;  %v1983_v6 = vld [vmem:[%s2749_s11] ss:$0 sm:$0xff] }
 0x542   : > { %2080 = vmatprep.subr.bf16.mxu1 %v2271_v8 }
 0x543   : > { %v1218_v26 = vpop.xlane.xlu1 %1217 }
 0x544   : > { %v1226_v5 = vadd.f32 %v1218_v26, %v1210_v42 }
 0x546   : > { %2199 = vrcp.f32 %v1226_v5 }
 0x547   : > { %2201 = vrcp.f32 %v1227_v9 }
 0x548   : > { %v2198_v13 = vpop.eup %2197 }
 0x54b   : > { %v1224_v46 = vpop.xlane.xlu0 %1223 }
 0x54c   : > { %v1228_v10 = vadd.f32 %v1224_v46, %v1212_v48 }
 0x54e   : > { %2203 = vrcp.f32 %v1228_v10 }
 0x550   : > { %v2200_v18 = vpop.eup %2199 }
 0x551   : > { %v2202_v30 = vpop.eup %2201 }
 0x558   : > { %v2204_v38 = vpop.eup %2203 }
 0x59b   : > { %v1274_v11 = vpop.f32.mrb[4].mxu1  ;;  %v1320_v12 = vpop.f32.mrb[16].mxu0 }
 0x59c   : > { %v1418_v14 = vadd.f32 %v1274_v11, %v1209_v3  ;;  %v1419_v15 = vadd.f32 %v1320_v12, %v1210_v42  ;;  %v2058_v16 = vpop.f32.mrb[5].mxu1  ;;  %v2064_v17 = vpop.f32.mrb[17].mxu0 }
 0x59d   : > { %v1277_v19 = vpop.f32.mrb[6].mxu1  ;;  %v1323_v20 = vpop.f32.mrb[18].mxu0 }
 0x59e   : > { %v1426_v21 = vmul.f32 %v2198_v13, %v1418_v14  ;;  %v1427_v22 = vmul.f32 %v2200_v18, %v1419_v15  ;;  %v2059_v23 = vpop.f32.mrb[7].mxu1  ;;  %v2065_v27 = vpop.f32.mrb[19].mxu0 }
 0x59f   : > { %v1965_v23 = vld [vmem:[%s2745_s7] ss:$0 sm:$0xff] }
 0x5a3   : > { %v1366_v28 = vpop.f32.mrb[8].mxu1  ;;  %v1412_v29 = vpop.f32.mrb[20].mxu0 }
 0x5a4   : > { %v1420_v31 = vadd.f32 %v1366_v28, %v1211_v41  ;;  %v1421_v32 = vadd.f32 %v1412_v29, %v1212_v48  ;;  %v2070_v33 = vpop.f32.mrb[9].mxu1  ;;  %v2076_v34 = vpop.f32.mrb[21].mxu0  ;;  %v2168_v48 = vld [vmem:[%s2744_s6 + $0x8] sm:$0xff]  }
 0x5a5   : > { %v1369_v40 = vpop.f32.mrb[10].mxu1  ;;  %v1415_v25 = vpop.f32.mrb[22].mxu0  ;;  %2081 = vmatpush3.bf16.msra.mxu1 %v2168_v48 }
 0x5a6   : > { %v1428_v24 = vmul.f32 %v2202_v30, %v1420_v31  ;;  %v1429_v43 = vmul.f32 %v2204_v38, %v1421_v32  ;;  %v2071_v44 = vpop.f32.mrb[11].mxu1  ;;  %v2077_v45 = vpop.f32.mrb[23].mxu0  ;;  %2094 = vmatprep.subr.bf16.mxu1 %v2271_v8 }
 0x5a7   : > { %v2171_v44 = vld [vmem:[%s2748_s10] sm:$0xff]   ;;  %v2172_v45 = vld [vmem:[%s2748_s10 + $0x8] sm:$0xff]  }
 0x5a8   : > { %v1430_v50 = vcombine.low %v1426_v21, %v1428_v24  ;;  %v1431_v51 = vcombine.high %v1426_v21, %v1428_v24  ;;  %v1446_v52 = vcombine.low %v1427_v22, %v1429_v43  ;;  %v1447_v53 = vcombine.high %v1427_v22, %v1429_v43  ;;  %v2169_v43 = vld [vmem:[%s2746_s8] sm:$0xff]  }
 0x5a9   : > { %2087 = vmatpush3.bf16.msra.mxu0 %v2169_v43 }
 0x5aa   : > { %v1438_v54 = vrot.slane %v1430_v50, %v2448_v37  ;;  %v1445_v55 = vrot.slane %v1431_v51, %v2448_v37  ;;  %v1454_v49 = vrot.slane %v1446_v52, %v2448_v37  ;;  %v1461_v56 = vrot.slane %v1447_v53, %v2448_v37  ;;  %2088 = vmatprep.subr.bf16.mxu0 %v2271_v8  ;;  %v2173_v50 = vld [vmem:[%s2748_s10 + $0x10] sm:$0xff]   ;;  %v2174_v51 = vld [vmem:[%s2748_s10 + $0x18] sm:$0xff]   ;;  %v2175_v52 = vld [vmem:[%s2748_s10 + $0x20] sm:$0xff]  }
 0x5ab   : > { %v2176_v53 = vld [vmem:[%s2748_s10 + $0x28] sm:$0xff]  }
 0x5ac   : > { %v1462_v57 = vcombine.low %v1438_v54, %v1454_v49  ;;  %v1463_v58 = vcombine.high %v1438_v54, %v1454_v49  ;;  %v1478_v60 = vcombine.low %v1445_v55, %v1461_v56  ;;  %v1479_v61 = vcombine.high %v1445_v55, %v1461_v56 }
 0x5ae   : > { %v1470_v59 = vrot.slane %v1462_v57, %v2458_v47  ;;  %v1477_v62 = vrot.slane %v1463_v58, %v2458_v47  ;;  %v1486_v63 = vrot.slane %v1478_v60, %v2458_v47  ;;  %v1493_v1 = vrot.slane %v1479_v61, %v2458_v47  ;;  %v1969_v57 = vld [vmem:[%s2741_s3] ss:$0 sm:$0xff] }
 0x5af   : > { %v1970_v60 = vld [vmem:[%s2742_s4] ss:$0 sm:$0xff] }
 0x5b0   : > { %v1498_v2 = vcombine.low %v1470_v59, %v1477_v62  ;;  %v1963_v35 = vcombine.high %v1470_v59, %v1477_v62  ;;  %v1514_v36 = vcombine.low %v1486_v63, %v1493_v1  ;;  %v1964_v3 = vcombine.high %v1486_v63, %v1493_v1  ;;  %v2177_v63 = vld [vmem:[%s2748_s10 + $0x30] sm:$0xff]   ;;  %v2178_v1 = vld [vmem:[%s2748_s10 + $0x38] sm:$0xff]  }
 0x5b2   : > { %v1505_v26 = vrot.slane %v1498_v2, %v2448_v37  ;;  %v1513_v42 = vrot.slane %v1963_v35, %v2448_v37  ;;  %v1521_v4 = vrot.slane %v1514_v36, %v2448_v37  ;;  %v1529_v5 = vrot.slane %v1964_v3, %v2448_v37  ;;  %v1971_v2 = vld [vmem:[%s2747_s9] ss:$0 sm:$0xff] }
 0x5b4   : > { %v1531_v7 = vcombine.high %v1505_v26, %v1513_v42  ;;  %v1547_v39 = vcombine.high %v1521_v4, %v1529_v5  ;;  %v1530_v41 = vcombine.low %v1505_v26, %v1513_v42  ;;  %v1546_v46 = vcombine.low %v1521_v4, %v1529_v5 }
 0x5b6   : > { %v1545_v9 = vrot.slane %v1531_v7, %v2458_v47  ;;  %v1561_v10 = vrot.slane %v1547_v39, %v2458_v47  ;;  %v1538_v37 = vrot.slane %v1530_v41, %v2458_v47  ;;  %v1554_v11 = vrot.slane %v1546_v46, %v2458_v47 }
 0x5b8   : > { %v1564_v12 = vcombine.low %v1545_v9, %v1561_v10  ;;  %v1563_v13 = vcombine.high %v1538_v37, %v1554_v11  ;;  %v1565_v14 = vcombine.high %v1545_v9, %v1561_v10  ;;  %v1562_v15 = vcombine.low %v1538_v37, %v1554_v11 }
 0x5ba   : > { %1571 = vrot.lane.b32.xlu0 %v1564_v12, %s2280_s20  ;;  %1567 = vrot.lane.b32.xlu1 %v1563_v13, %s2281_s21  ;;  %s1942_s20 = sshll.u32 %s429_s16, 3  ;;  %s2283_s21 = smov [#allocation3]  }
 0x5bb   : > { %s431_s24 = scalar_lea.vmem [#allocation3], %s1942_s20 }
 0x5bc   : > { %s1879_s30 = sshll.u32 %s431_s24, 4  ;;  %s2697_s30 = int_to_ptr.vmem [resolvable:$true] %s1879_s30 }
 0x5bd   : > { %s2207_s20 = scalar_lea.vmem %s2697_s30, 128 }
 0x5be   : > { %1575 = vrot.lane.b32.xlu1 %v1565_v14, %s2282_s22  ;;  %p2208_p11 = scmp.ne.s32.totalorder %s2697_s30, %s2207_s20  ;;  %s2211_s22 = sshll.u32 %s2283_s21, 4  ;;  %s2212_s22 = int_to_ptr.vmem [resolvable:$false] %s2211_s22 }
 0x5bf   : > { %s2213_s2 = scalar_lea.vmem %s2212_s22, 256  ;;  %p2214_p0 = scmp.lt.s32.totalorder %s2697_s30, %s2212_s22 }
 0x5c0   : > { %p2209_p12 = pnand %p2208_p11, %p2392_p5  ;;  %p2215_p1 = scmp.lt.s32.totalorder %s2213_s2, %s2207_s20 }
 0x5c2   : > { %p2210_p13 = pneg %p2209_p12  ;;  %p2216_p2 = por %p2215_p1, %p2214_p0 }
 0x5c4   : > { %p2217_p3 = pnand %p2216_p2, %p2210_p13 }
 0x62c   : > { %v1568_v16 = vpop.permute.xlu1 %1567  ;;  %v1572_v17 = vpop.permute.xlu0 %1571 }
 0x62d   : > { %v1578_v18 = vsel %vm984_vm2, %v1562_v15, %v1568_v16 }
 0x62e   : > { %v1580_v19 = vsel %vm1579_vm4, %v1578_v18, %v1572_v17 }
 0x630   : > { %v1576_v47 = vpop.permute.xlu1 %1575 }
 0x631   : > { %v1582_v20 = vsel %vm1581_vm5, %v1580_v19, %v1576_v47 }
 0x632   : > { %1583 = vst.msk [vmem:[#allocation2] sm:$0xff] %vm440_vm0, %v1582_v20 }
 0x639   : > { %v1584_v21 = vld [vmem:[#allocation2] sm:$0xff] }
 0x63a   : > { %v1585_v22 = vpack.c.bf16 %v1584_v21, %v1584_v21 }
 0x63c   : > { %2083 = vmatmul.mubr.msk.bf16.vlgmr.msra.gmra.mrb[12].mxu1 %vm440_vm0, %v1585_v22 }
 0x63d   : > { %2110 = vmatprep.mubr.msk.bf16.mxu1 %vm2272_vm1, %v2271_v8  ;;  %2095 = vmatpush3.bf16.msra.mxu1 %v2171_v44 }
 0x63e   : > { %2096 = vmatprep.subr.bf16.mxu1 %v2271_v8 }
 0x641   : > { %2097 = vmatpush3.bf16.msra.mxu1 %v2172_v45 }
 0x642   : > { %2098 = vmatprep.subr.bf16.mxu1 %v2271_v8 }
 0x645   : > { %2099 = vmatpush3.bf16.msra.mxu1 %v2173_v50 }
 0x646   : > { %2100 = vmatprep.subr.bf16.mxu1 %v2271_v8 }
 0x649   : > { %2101 = vmatpush3.bf16.msra.mxu1 %v2174_v51 }
 0x64a   : > { %2102 = vmatprep.subr.bf16.mxu1 %v2271_v8 }
 0x64d   : > { %2103 = vmatpush3.bf16.msra.mxu1 %v2175_v52 }
 0x64e   : > { %2104 = vmatprep.subr.bf16.mxu1 %v2271_v8 }
 0x651   : > { %2105 = vmatpush3.bf16.msra.mxu1 %v2176_v53 }
 0x652   : > { %2106 = vmatprep.subr.bf16.mxu1 %v2271_v8 }
 0x655   : > { %2107 = vmatpush3.bf16.msra.mxu1 %v2177_v63 }
 0x656   : > { %2108 = vmatprep.subr.bf16.mxu1 %v2271_v8 }
 0x659   : > { %2109 = vmatpush3.bf16.msra.mxu1 %v2178_v1 }
 0x70f   : > { %v1646_v27 = vpop.f32.mrb[12].mxu1 }
 0x710   : > { %v1647_v28 = vadd.f32 %v1965_v23, %v1646_v27  ;;  %v2084_v29 = vpop.f32.mrb[13].mxu1 }
 0x711   : > { %v1649_v30 = vpop.f32.mrb[14].mxu1 }
 0x712   : > { %v2632_v31 = vadd.f32 %v1647_v28, %v2407_v0  ;;  %v2085_v32 = vpop.f32.mrb[15].mxu1  ;;  %v2170_v0 = vld [vmem:[%s2746_s8 + $0x8] sm:$0xff]  }
 0x713   : > { %2089 = vmatpush3.bf16.msra.mxu0 %v2170_v0 }
 0x714   : > { %v1655_v33 = vsel %vm440_vm0, %v2632_v31, 0.0 }
 0x715   : > { %1656 = vadd.xlane.f32.xlu1 %v1655_v33 }
 0x7a2   : > { %v1657_v34 = vpop.xlane.xlu1 %1656 }
 0x7a3   : > { %v1658_v38 = vmul.f32 0.03125, %v1657_v34 }
 0x7a5   : > { %v1659_v40 = vsub.f32 %v2632_v31, %v1658_v38 }
 0x7a7   : > { %v1660_v25 = vmul.f32 %v1659_v40, %v1659_v40 }
 0x7a9   : > { %v1661_v24 = vsel %vm440_vm0, %v1660_v25, 0.0 }
 0x7aa   : > { %1662 = vadd.xlane.f32.xlu0 %v1661_v24 }
 0x837   : > { %v1663_v54 = vpop.xlane.xlu0 %1662 }
 0x838   : > { %v1664_v55 = vmul.f32 0.03125, %v1663_v54 }
 0x83a   : > { %v1665_v49 = vadd.f32 1e-05, %v1664_v55 }
 0x83c   : > { %2205 = vrsqrt.f32 %v1665_v49 }
 0x846   : > { %v2206_v56 = vpop.eup %2205 }
 0x847   : > { %v1667_v58 = vmul.f32 %v2206_v56, %v1659_v40 }
 0x849   : > { %v1674_v61 = vmul.f32 %v1969_v57, %v1667_v58 }
 0x84b   : > { %v1681_v59 = vadd.f32 %v1970_v60, %v1674_v61 }
 0x84d   : > { %v1682_v62 = vpack.c.bf16 %v1681_v59, %v1681_v59 }
 0x84f   : > { %2091 = vmatmul.mubr.msk.bf16.vlgmr.msra.gmra.mrb[24].mxu0 %vm440_vm0, %v1682_v62 }
 0x922   : > { %v1743_v35 = vpop.f32.mrb[24].mxu0 }
 0x923   : > { %v1744_v36 = vadd.f32 %v1971_v2, %v1743_v35  ;;  %v2092_v3 = vpop.f32.mrb[25].mxu0 }
 0x924   : > { %v1746_v26 = vpop.f32.mrb[26].mxu0 }
 0x925   : > { %v1749_v42 = vmax.f32 %v1744_v36, 0.0  ;;  %v2093_v4 = vpop.f32.mrb[27].mxu0 }
 0x927   : > { %v1750_v5 = vpack.c.bf16 %v1749_v42, %v1749_v42 }
 0x929   : > { %2111 = vmatmul.mubr.bf16.vlgmr.msra.gmra.mrb[16].mxu1 %v1750_v5 }
 0x9fc   : > { %v1849_v8 = vpop.f32.mrb[16].mxu1 }
 0x9fd   : > { %v1855_v7 = vadd.f32 %v1849_v8, %v2632_v31  ;;  %v2112_v39 = vpop.f32.mrb[17].mxu1 }
 0x9fe   : > { %v1852_v41 = vpop.f32.mrb[18].mxu1 }
 0x9ff   : > { %v1863_v46 = vadd.f32 %v1983_v6, %v1855_v7  ;;  %v2113_v48 = vpop.f32.mrb[19].mxu1 }
 0xa01   : > { %1864 = vst.msk [vmem:[%s431_s24] sm:$0xff] %vm440_vm0, %v1863_v46 }
 0xa02   : > { %2220 = shalt.err (!%p2217_p3)
}
 0xa03   : > { %s2221_s0 = scalar_lea.hbm %s2695_s1, 128  ;;  %s2225_s24 = scalar_lea.hbm %s2751_s13, 256 }
 0xa04   : > { %p2222_p4 = scmp.ne.s32.totalorder %s2695_s1, %s2221_s0  ;;  %p2226_p9 = scmp.lt.u32.totalorder %s2695_s1, %s2751_s13 }
 0xa05   : > { %p2227_p10 = scmp.lt.u32.totalorder %s2225_s24, %s2221_s0  ;;  %p2229_p12 = scmp.lt.u32.totalorder %s2221_s0, %s2695_s1 }
 0xa06   : > { %p2223_p7 = pnand %p2222_p4, %p2392_p5 }
 0xa07   : > { %p2228_p11 = por %p2227_p10, %p2226_p9 }
 0xa08   : > { %p2224_p8 = pneg %p2223_p7 }
 0xa09   : > { %p2230_p13 = por %p2229_p12, %p2228_p11 }
 0xa0b   : > { %p2231_p0 = pnand %p2230_p13, %p2224_p8 }
 0xa0d   : > { %2234 = shalt.err (!%p2231_p0)
}
 0xa0e   : > { %2114 = dma.vmem_to_hbm [thread:$0]  (%p2392_p5), %s2697_s30, 128, %s2695_s1, %s1866_s29  }
 0xa0f PF: > { %p2120_p1 = scmp.ge.s32.totalorder %s2269_s28, 2  ;;  %s1891_s2 = sand.u32 1, %s2257_s25  }
 0xa10   : > { %s1892_s20 = scalar_lea.sflag [#allocation4], %s1891_s2 }
 0xa11   : > { %p2117_p2 = pnand %p2120_p1, %p2396_p6 }
 0xa13   : > { %2252 = dma.done.wait (!%p2117_p2), %s1892_s20, 128  }
 0xa14   : > { %2254 = vsyncadd (!%p2117_p2), %s1892_s20, 4294967168  ;;  %p23_p3 = scmp.ge.s32.totalorder %s2379_s14, 4   ;;  %s2760_s25 = smov %s2261_s26 }
 0xa15   : > { %s2761_s26 = smov %s2265_s27  ;;  %s2762_s27 = smov %s2390_s17 }
 0xa16   : > { %s2763_s28 = smov %s2379_s14  ;;  %25 = sbr.rel (!%p23_p3) target bundleno = 7 (0x7), region = 107 }
 0xa1d   :  { %1897 = vsyncpa [#allocation4], 1 }
 0xa1e   :  { %1899 = vsyncpa [#allocation4 + $0x1], 1 }

</bundles_post_ra>
